<compile_context>
chip_gen: v5e
topology: v5e:2x2
jax: 0.10.0
libtpu: 0.0.40
codegen_flags: <defaults>
</compile_context>

<pallas_src>
import functools

import jax
import jax.numpy as jnp
import numpy as np
from jax.experimental import pallas as pl
from jax.experimental.pallas import tpu as pltpu


# ----------------------------------------------------------------------------
# Exact GELU built only from Mosaic-friendly elementwise ops
# ----------------------------------------------------------------------------
_SQRT1_2 = 0.7071067811865476


def _erf_approx(z):
    # Abramowitz & Stegun 7.1.26, |err| <= 1.5e-7 -- more than enough for f32
    # GELU, and uses only abs/where/exp/mul/add/div (all lower cleanly on TPU).
    p = 0.3275911
    a1, a2, a3, a4, a5 = (0.254829592, -0.284496736, 1.421413741,
                          -1.453152027, 1.061405429)
    az = jnp.abs(z)
    t = 1.0 / (1.0 + p * az)
    poly = ((((a5 * t + a4) * t + a3) * t + a2) * t + a1) * t
    e = 1.0 - poly * jnp.exp(-az * az)
    return jnp.where(z < 0, -e, e)


def _gelu(y):
    # Matches torch.nn.GELU(approximate='none') = 0.5*y*(1 + erf(y/sqrt(2))).
    return 0.5 * y * (1.0 + _erf_approx(y * _SQRT1_2))


# ----------------------------------------------------------------------------
# Kernel 1: fused matmul + bias (+ optional GELU)  -- used for the 1x1 convs
# and for the with_depconv=False Linear branch.
# ----------------------------------------------------------------------------
def _mm_bias_kernel(a_ref, b_ref, bias_ref, o_ref, *, apply_gelu):
    acc = jnp.dot(a_ref[...], b_ref[...], preferred_element_type=jnp.float32)
    y = acc + bias_ref[...]
    if apply_gelu:
        y = _gelu(y)
    o_ref[...] = y.astype(o_ref.dtype)


def _round_up(x, m):
    return (x + m - 1) // m * m


def matmul_bias(a, b, bias, *, apply_gelu=False, tm=256, tn=512):
    """o = a @ b + bias (optionally GELU).  a:(M,K)  b:(K,N)  bias:(N,)."""
    M, K = a.shape
    Kb, N = b.shape
    assert K == Kb
    # --- M tiling: big blocks, cdiv grid, zero-padded remainder (no tm=M). ---
    tm = min(tm, _round_up(M, 8))
    Mp = _round_up(M, tm)
    if Mp != M:
        a = jnp.pad(a, ((0, Mp - M), (0, 0)))
    # --- Cout tiling only when it is large (keeps output stores lane-dense). --
    if N > tn:
        Np = _round_up(N, tn)
        if Np != N:
            b = jnp.pad(b, ((0, 0), (0, Np - N)))
            bias = jnp.pad(bias, (0, Np - N))
    else:
        tn, Np = N, N
    grid = (Mp // tm, Np // tn)
    # K here is just the channel count of a 1x1 conv, so a whole-K block
    # (tm*K + K*tn + tm*tn f32, double-buffered) stays well inside v7x's
    # 32 MiB scoped VMEM for typical MLP widths.
    # TODO(synk): add a K reduction grid axis (+f32 accumulator) for K >~ 8k.
    out = pl.pallas_call(
        functools.partial(_mm_bias_kernel, apply_gelu=apply_gelu),
        out_shape=jax.ShapeDtypeStruct((Mp, Np), a.dtype),
        grid=grid,
        in_specs=[
            pl.BlockSpec((tm, K), lambda i, j: (i, 0)),
            pl.BlockSpec((K, tn), lambda i, j: (0, j)),
            pl.BlockSpec((1, tn), lambda i, j: (0, j)),
        ],
        out_specs=pl.BlockSpec((tm, tn), lambda i, j: (i, j)),
        compiler_params=pltpu.CompilerParams(
            dimension_semantics=("parallel", "parallel")),
        cost_estimate=pl.CostEstimate(
            flops=2 * Mp * K * Np,
            transcendentals=(Mp * Np) if apply_gelu else 0,
            bytes_accessed=4 * (Mp * K + K * Np + Mp * Np)),
    )(a, b, bias.reshape(1, Np))
    return out[:M, :N]


# ----------------------------------------------------------------------------
# Kernel 2: depthwise 3x3 conv + bias + GELU, streamed row-by-row.
# Three BlockSpecs on the SAME padded array give the (i, i+1, i+2) halo window
# per output row, so no im2col / shifted copies are materialized in HBM.
# ----------------------------------------------------------------------------
def _dw3x3_bias_gelu_kernel(wd_ref, bd_ref, r0_ref, r1_ref, r2_ref, o_ref):
    W = o_ref.shape[2]
    rows = (r0_ref[0, 0, :, :], r1_ref[0, 0, :, :], r2_ref[0, 0, :, :])  # (W+2,C)
    acc = bd_ref[0:1, :]                       # (1, C) -> broadcasts to (W, C)
    for di in range(3):
        r = rows[di]
        for dj in range(3):
            idx = 3 * di + dj
            acc = acc + r[dj:dj + W, :] * wd_ref[idx:idx + 1, :]
    o_ref[0, 0, :, :] = _gelu(acc).astype(o_ref.dtype)


def depthwise3x3_bias_gelu(h, wd, bd):
    """h:(N,H,W,C) NHWC (the fc1 output), wd:(3,3,C), bd:(C,)."""
    N, H, W, C = h.shape
    # PyTorch pads the *depconv input* (= fc1 output) with zeros: do the same.
    hp = jnp.pad(h, ((0, 0), (1, 1), (1, 1), (0, 0)))
    Wp = W + 2
    wd9 = wd.reshape(9, C)

    def row_spec(k):
        # Block size 1 along (padded) H  =>  block index == element row index,
        # so offsets of +0/+1/+2 elements are expressible with blocked specs.
        return pl.BlockSpec((1, 1, Wp, C), lambda n, i: (n, i + k, 0, 0))

    return pl.pallas_call(
        _dw3x3_bias_gelu_kernel,
        out_shape=jax.ShapeDtypeStruct((N, H, W, C), h.dtype),
        grid=(N, H),
        in_specs=[
            pl.BlockSpec((9, C), lambda n, i: (0, 0)),   # taps stay VMEM-resident
            pl.BlockSpec((1, C), lambda n, i: (0, 0)),
            row_spec(0), row_spec(1), row_spec(2),
        ],
        out_specs=pl.BlockSpec((1, 1, W, C), lambda n, i: (n, i, 0, 0)),
        compiler_params=pltpu.CompilerParams(
            dimension_semantics=("parallel", "parallel")),
        cost_estimate=pl.CostEstimate(
            flops=18 * N * H * W * C,
            transcendentals=N * H * W * C,
            bytes_accessed=4 * (3 * N * H * Wp * C + N * H * W * C)),
    )(wd9, bd.reshape(1, C), hp, hp, hp)


# ----------------------------------------------------------------------------
# Mlp forward passes
# ----------------------------------------------------------------------------
@jax.jit
def mlp_forward_depconv(x, params):
    """with_depconv=True branch. x:(N,H,W,Cin) NHWC -> (N,H,W,Cout) NHWC."""
    N, H, W, Cin = x.shape
    Ch = params["w1"].shape[1]
    Cout = params["w2"].shape[1]
    M = N * H * W
    h = matmul_bias(x.reshape(M, Cin), params["w1"], params["b1"])        # fc1
    g = depthwise3x3_bias_gelu(h.reshape(N, H, W, Ch),                    # depconv
                               params["wd"], params["bd"])                # + GELU
    out = matmul_bias(g.reshape(M, Ch), params["w2"], params["b2"])       # fc2
    # dropout(p=0.0) is the identity at inference.
    return out.reshape(N, H, W, Cout)


@jax.jit
def mlp_forward_linear(x, params):
    """with_depconv=False branch: fc1 -> GELU -> fc2 along the last axis."""
    lead = x.shape[:-1]
    Cin = x.shape[-1]
    Cout = params["w2"].shape[1]
    x2 = x.reshape(-1, Cin)
    h = matmul_bias(x2, params["w1"], params["b1"], apply_gelu=True)
    out = matmul_bias(h, params["w2"], params["b2"])
    return out.reshape(lead + (Cout,))


# ----------------------------------------------------------------------------
# Deterministic parameters & pure-JAX references
# ----------------------------------------------------------------------------
def init_params(key, c_in, c_hidden, c_out):
    k1, k2, k3, k4, k5, k6 = jax.random.split(key, 6)
    return {
        "w1": jax.random.normal(k1, (c_in, c_hidden), jnp.float32) / np.sqrt(c_in),
        "b1": jax.random.normal(k2, (c_hidden,), jnp.float32) * 0.05,
        "wd": jax.random.normal(k3, (3, 3, c_hidden), jnp.float32) / 3.0,
        "bd": jax.random.normal(k4, (c_hidden,), jnp.float32) * 0.05,
        "w2": jax.random.normal(k5, (c_hidden, c_out), jnp.float32) / np.sqrt(c_hidden),
        "b2": jax.random.normal(k6, (c_out,), jnp.float32) * 0.05,
    }


def _gelu_ref(y):
    return 0.5 * y * (1.0 + jax.scipy.special.erf(y * _SQRT1_2))


def reference_depconv(x, params):
    N, H, W, _ = x.shape
    h = jnp.einsum("nhwc,cd->nhwd", x, params["w1"],
                   precision=jax.lax.Precision.HIGHEST) + params["b1"]
    hp = jnp.pad(h, ((0, 0), (1, 1), (1, 1), (0, 0)))
    acc = jnp.zeros_like(h) + params["bd"]
    for di in range(3):
        for dj in range(3):
            acc = acc + hp[:, di:di + H, dj:dj + W, :] * params["wd"][di, dj, :]
    g = _gelu_ref(acc)
    return jnp.einsum("nhwc,cd->nhwd", g, params["w2"],
                      precision=jax.lax.Precision.HIGHEST) + params["b2"]


def reference_linear(x, params):
    h = _gelu_ref(jnp.einsum("...c,cd->...d", x, params["w1"],
                             precision=jax.lax.Precision.HIGHEST) + params["b1"])
    return jnp.einsum("...c,cd->...d", h, params["w2"],
                      precision=jax.lax.Precision.HIGHEST) + params["b2"]


# ----------------------------------------------------------------------------
if __name__ == "__main__":
    key = jax.random.PRNGKey(0)
    kx, kp, kl = jax.random.split(key, 3)

    # with_depconv=True (default) branch: NHWC input.
    N, H, W = 2, 16, 16
    c_in, c_hidden, c_out = 32, 128, 32      # hidden=128 keeps lanes dense
    x = jax.random.normal(kx, (N, H, W, c_in), jnp.float32)
    params = init_params(kp, c_in, c_hidden, c_out)

    out = jax.block_until_ready(mlp_forward_depconv(x, params))
    assert out.shape == (N, H, W, c_out), out.shape
    ref = reference_depconv(x, params)
    np.testing.assert_allclose(np.asarray(out), np.asarray(ref),
                               rtol=2e-3, atol=2e-3)

    # with_depconv=False branch: token MLP on the last axis.
    xt = jax.random.normal(kl, (2, 64, c_in), jnp.float32)
    out_l = jax.block_until_ready(mlp_forward_linear(xt, params))
    assert out_l.shape == (2, 64, c_out), out_l.shape
    ref_l = reference_linear(xt, params)
    np.testing.assert_allclose(np.asarray(out_l), np.asarray(ref_l),
                               rtol=2e-3, atol=2e-3)

    print("KERNEL_OK")
</pallas_src>

<mosaic_0001>
module attributes {stable_mosaic.version = 11 : i64} {
  func.func @_mm_bias_kernel(%arg0: i32, %arg1: i32, %arg2: memref<256x32xf32, #tpu.memory_space<vmem>>, %arg3: memref<32x128xf32, #tpu.memory_space<vmem>>, %arg4: memref<1x128xf32, #tpu.memory_space<vmem>>, %arg5: memref<256x128xf32, #tpu.memory_space<vmem>>) attributes {dimension_semantics = [#tpu.dimension_semantics<parallel>, #tpu.dimension_semantics<parallel>], iteration_bounds = array<i64: 2, 1>, scalar_prefetch = 0 : i64, scratch_operands = 0 : i64, tpu.core_type = #tpu.core_type<tc>, window_params = [{transform_indices = @transform_0, window_bounds = array<i64: 256, 32>}, {transform_indices = @transform_1, window_bounds = array<i64: 32, 128>}, {transform_indices = @transform_2, window_bounds = array<i64: 1, 128>}, {transform_indices = @transform_3, window_bounds = array<i64: 256, 128>}]} {
    %c0 = arith.constant 0 : index
    %c0_0 = arith.constant 0 : index
    %0 = vector.load %arg2[%c0, %c0_0] : memref<256x32xf32, #tpu.memory_space<vmem>>, vector<256x32xf32>
    %c0_1 = arith.constant 0 : index
    %c0_2 = arith.constant 0 : index
    %1 = vector.load %arg3[%c0_1, %c0_2] : memref<32x128xf32, #tpu.memory_space<vmem>>, vector<32x128xf32>
    %cst = arith.constant dense<0.000000e+00> : vector<256x128xf32>
    %2 = tpu.matmul %0, %1, %cst {dimension_numbers = #tpu.dot_dimension_numbers<[1], [0], [0], [1], [0, 0, 1, 1], [], []>} : vector<256x32xf32>, vector<32x128xf32>, vector<256x128xf32> -> vector<256x128xf32>
    %c0_3 = arith.constant 0 : index
    %c0_4 = arith.constant 0 : index
    %3 = vector.load %arg4[%c0_3, %c0_4] : memref<1x128xf32, #tpu.memory_space<vmem>>, vector<1x128xf32>
    %4 = vector.broadcast %3 : vector<1x128xf32> to vector<256x128xf32>
    %5 = arith.addf %2, %4 : vector<256x128xf32>
    %c0_5 = arith.constant 0 : index
    %c0_6 = arith.constant 0 : index
    %6 = vector.load %arg5[%c0_5, %c0_6] : memref<256x128xf32, #tpu.memory_space<vmem>>, vector<256x128xf32>
    tpu.vector_store %arg5[%c0_5, %c0_6], %5 {strides = array<i32>} : memref<256x128xf32, #tpu.memory_space<vmem>>, vector<256x128xf32>,
    return
  }
  func.func @transform_0(%arg0: i32, %arg1: i32) -> (i32, i32) {
    %c0_i32 = arith.constant 0 : i32
    %c0_i32_0 = arith.constant 0 : i32
    return %arg0, %c0_i32 : i32, i32
  }
  func.func @transform_1(%arg0: i32, %arg1: i32) -> (i32, i32) {
    %c0_i32 = arith.constant 0 : i32
    %c0_i32_0 = arith.constant 0 : i32
    return %c0_i32, %arg1 : i32, i32
  }
  func.func @transform_2(%arg0: i32, %arg1: i32) -> (i32, i32) {
    %c0_i32 = arith.constant 0 : i32
    %c0_i32_0 = arith.constant 0 : i32
    return %c0_i32, %arg1 : i32, i32
  }
  func.func @transform_3(%arg0: i32, %arg1: i32) -> (i32, i32) {
    %c0_i32 = arith.constant 0 : i32
    return %arg0, %arg1 : i32, i32
  }
}

module attributes {stable_mosaic.version = 11 : i64} {
  func.func @_dw3x3_bias_gelu_kernel(%arg0: i32, %arg1: i32, %arg2: memref<9x128xf32, #tpu.memory_space<vmem>>, %arg3: memref<1x128xf32, #tpu.memory_space<vmem>>, %arg4: memref<1x1x18x128xf32, #tpu.memory_space<vmem>>, %arg5: memref<1x1x18x128xf32, #tpu.memory_space<vmem>>, %arg6: memref<1x1x18x128xf32, #tpu.memory_space<vmem>>, %arg7: memref<1x1x16x128xf32, #tpu.memory_space<vmem>>) attributes {dimension_semantics = [#tpu.dimension_semantics<parallel>, #tpu.dimension_semantics<parallel>], iteration_bounds = array<i64: 2, 16>, scalar_prefetch = 0 : i64, scratch_operands = 0 : i64, tpu.core_type = #tpu.core_type<tc>, window_params = [{pipeline_mode = #tpu.pipeline_mode<synchronous>, transform_indices = @transform_0, window_bounds = array<i64: 9, 128>}, {pipeline_mode = #tpu.pipeline_mode<synchronous>, transform_indices = @transform_1, window_bounds = array<i64: 1, 128>}, {transform_indices = @transform_2, window_bounds = array<i64: 1, 1, 18, 128>}, {transform_indices = @transform_3, window_bounds = array<i64: 1, 1, 18, 128>}, {transform_indices = @transform_4, window_bounds = array<i64: 1, 1, 18, 128>}, {transform_indices = @transform_5, window_bounds = array<i64: 1, 1, 16, 128>}]} {
    %c0 = arith.constant 0 : index
    %c0_0 = arith.constant 0 : index
    %c0_1 = arith.constant 0 : index
    %c0_2 = arith.constant 0 : index
    %0 = vector.load %arg4[%c0, %c0_0, %c0_1, %c0_2] : memref<1x1x18x128xf32, #tpu.memory_space<vmem>>, vector<1x1x18x128xf32>
    %1 = vector.shape_cast %0 : vector<1x1x18x128xf32> to vector<18x128xf32>
    %c0_3 = arith.constant 0 : index
    %c0_4 = arith.constant 0 : index
    %c0_5 = arith.constant 0 : index
    %c0_6 = arith.constant 0 : index
    %2 = vector.load %arg5[%c0_3, %c0_4, %c0_5, %c0_6] : memref<1x1x18x128xf32, #tpu.memory_space<vmem>>, vector<1x1x18x128xf32>
    %3 = vector.shape_cast %2 : vector<1x1x18x128xf32> to vector<18x128xf32>
    %c0_7 = arith.constant 0 : index
    %c0_8 = arith.constant 0 : index
    %c0_9 = arith.constant 0 : index
    %c0_10 = arith.constant 0 : index
    %4 = vector.load %arg6[%c0_7, %c0_8, %c0_9, %c0_10] : memref<1x1x18x128xf32, #tpu.memory_space<vmem>>, vector<1x1x18x128xf32>
    %5 = vector.shape_cast %4 : vector<1x1x18x128xf32> to vector<18x128xf32>
    %c0_11 = arith.constant 0 : index
    %c0_12 = arith.constant 0 : index
    %6 = vector.load %arg3[%c0_11, %c0_12] : memref<1x128xf32, #tpu.memory_space<vmem>>, vector<1x128xf32>
    %7 = vector.extract_strided_slice %1 {offsets = [0, 0], sizes = [16, 128], strides = [1, 1]} : vector<18x128xf32> to vector<16x128xf32>
    %c0_13 = arith.constant 0 : index
    %c0_14 = arith.constant 0 : index
    %8 = vector.load %arg2[%c0_13, %c0_14] : memref<9x128xf32, #tpu.memory_space<vmem>>, vector<1x128xf32>
    %9 = vector.broadcast %8 : vector<1x128xf32> to vector<16x128xf32>
    %10 = arith.mulf %7, %9 : vector<16x128xf32>
    %11 = vector.broadcast %6 : vector<1x128xf32> to vector<16x128xf32>
    %12 = arith.addf %11, %10 : vector<16x128xf32>
    %13 = vector.extract_strided_slice %1 {offsets = [1, 0], sizes = [16, 128], strides = [1, 1]} : vector<18x128xf32> to vector<16x128xf32>
    %c1 = arith.constant 1 : index
    %c0_15 = arith.constant 0 : index
    %14 = vector.load %arg2[%c1, %c0_15] : memref<9x128xf32, #tpu.memory_space<vmem>>, vector<1x128xf32>
    %15 = vector.broadcast %14 : vector<1x128xf32> to vector<16x128xf32>
    %16 = arith.mulf %13, %15 : vector<16x128xf32>
    %17 = arith.addf %12, %16 : vector<16x128xf32>
    %18 = vector.extract_strided_slice %1 {offsets = [2, 0], sizes = [16, 128], strides = [1, 1]} : vector<18x128xf32> to vector<16x128xf32>
    %c2 = arith.constant 2 : index
    %c0_16 = arith.constant 0 : index
    %19 = vector.load %arg2[%c2, %c0_16] : memref<9x128xf32, #tpu.memory_space<vmem>>, vector<1x128xf32>
    %20 = vector.broadcast %19 : vector<1x128xf32> to vector<16x128xf32>
    %21 = arith.mulf %18, %20 : vector<16x128xf32>
    %22 = arith.addf %17, %21 : vector<16x128xf32>
    %23 = vector.extract_strided_slice %3 {offsets = [0, 0], sizes = [16, 128], strides = [1, 1]} : vector<18x128xf32> to vector<16x128xf32>
    %c3 = arith.constant 3 : index
    %c0_17 = arith.constant 0 : index
    %24 = vector.load %arg2[%c3, %c0_17] : memref<9x128xf32, #tpu.memory_space<vmem>>, vector<1x128xf32>
    %25 = vector.broadcast %24 : vector<1x128xf32> to vector<16x128xf32>
    %26 = arith.mulf %23, %25 : vector<16x128xf32>
    %27 = arith.addf %22, %26 : vector<16x128xf32>
    %28 = vector.extract_strided_slice %3 {offsets = [1, 0], sizes = [16, 128], strides = [1, 1]} : vector<18x128xf32> to vector<16x128xf32>
    %c4 = arith.constant 4 : index
    %c0_18 = arith.constant 0 : index
    %29 = vector.load %arg2[%c4, %c0_18] : memref<9x128xf32, #tpu.memory_space<vmem>>, vector<1x128xf32>
    %30 = vector.broadcast %29 : vector<1x128xf32> to vector<16x128xf32>
    %31 = arith.mulf %28, %30 : vector<16x128xf32>
    %32 = arith.addf %27, %31 : vector<16x128xf32>
    %33 = vector.extract_strided_slice %3 {offsets = [2, 0], sizes = [16, 128], strides = [1, 1]} : vector<18x128xf32> to vector<16x128xf32>
    %c5 = arith.constant 5 : index
    %c0_19 = arith.constant 0 : index
    %34 = vector.load %arg2[%c5, %c0_19] : memref<9x128xf32, #tpu.memory_space<vmem>>, vector<1x128xf32>
    %35 = vector.broadcast %34 : vector<1x128xf32> to vector<16x128xf32>
    %36 = arith.mulf %33, %35 : vector<16x128xf32>
    %37 = arith.addf %32, %36 : vector<16x128xf32>
    %38 = vector.extract_strided_slice %5 {offsets = [0, 0], sizes = [16, 128], strides = [1, 1]} : vector<18x128xf32> to vector<16x128xf32>
    %c6 = arith.constant 6 : index
    %c0_20 = arith.constant 0 : index
    %39 = vector.load %arg2[%c6, %c0_20] : memref<9x128xf32, #tpu.memory_space<vmem>>, vector<1x128xf32>
    %40 = vector.broadcast %39 : vector<1x128xf32> to vector<16x128xf32>
    %41 = arith.mulf %38, %40 : vector<16x128xf32>
    %42 = arith.addf %37, %41 : vector<16x128xf32>
    %43 = vector.extract_strided_slice %5 {offsets = [1, 0], sizes = [16, 128], strides = [1, 1]} : vector<18x128xf32> to vector<16x128xf32>
    %c7 = arith.constant 7 : index
    %c0_21 = arith.constant 0 : index
    %44 = vector.load %arg2[%c7, %c0_21] : memref<9x128xf32, #tpu.memory_space<vmem>>, vector<1x128xf32>
    %45 = vector.broadcast %44 : vector<1x128xf32> to vector<16x128xf32>
    %46 = arith.mulf %43, %45 : vector<16x128xf32>
    %47 = arith.addf %42, %46 : vector<16x128xf32>
    %48 = vector.extract_strided_slice %5 {offsets = [2, 0], sizes = [16, 128], strides = [1, 1]} : vector<18x128xf32> to vector<16x128xf32>
    %c8 = arith.constant 8 : index
    %c0_22 = arith.constant 0 : index
    %49 = vector.load %arg2[%c8, %c0_22] : memref<9x128xf32, #tpu.memory_space<vmem>>, vector<1x128xf32>
    %50 = vector.broadcast %49 : vector<1x128xf32> to vector<16x128xf32>
    %51 = arith.mulf %48, %50 : vector<16x128xf32>
    %52 = arith.addf %47, %51 : vector<16x128xf32>
    %cst = arith.constant 5.000000e-01 : f32
    %53 = vector.broadcast %cst : f32 to vector<16x128xf32>
    %54 = arith.mulf %53, %52 : vector<16x128xf32>
    %cst_23 = arith.constant 0.707106769 : f32
    %55 = vector.broadcast %cst_23 : f32 to vector<16x128xf32>
    %56 = arith.mulf %52, %55 : vector<16x128xf32>
    %57 = math.absf %56 : vector<16x128xf32>
    %cst_24 = arith.constant 0.327591091 : f32
    %58 = vector.broadcast %cst_24 : f32 to vector<16x128xf32>
    %59 = arith.mulf %58, %57 : vector<16x128xf32>
    %cst_25 = arith.constant 1.000000e+00 : f32
    %60 = vector.broadcast %cst_25 : f32 to vector<16x128xf32>
    %61 = arith.addf %60, %59 : vector<16x128xf32>
    %cst_26 = arith.constant 1.000000e+00 : f32
    %62 = vector.broadcast %cst_26 : f32 to vector<16x128xf32>
    %63 = arith.divf %62, %61 : vector<16x128xf32>
    %cst_27 = arith.constant 1.06140542 : f32
    %64 = vector.broadcast %cst_27 : f32 to vector<16x128xf32>
    %65 = arith.mulf %64, %63 : vector<16x128xf32>
    %cst_28 = arith.constant -1.45315206 : f32
    %66 = vector.broadcast %cst_28 : f32 to vector<16x128xf32>
    %67 = arith.addf %65, %66 : vector<16x128xf32>
    %68 = arith.mulf %67, %63 : vector<16x128xf32>
    %cst_29 = arith.constant 1.42141378 : f32
    %69 = vector.broadcast %cst_29 : f32 to vector<16x128xf32>
    %70 = arith.addf %68, %69 : vector<16x128xf32>
    %71 = arith.mulf %70, %63 : vector<16x128xf32>
    %cst_30 = arith.constant -0.284496725 : f32
    %72 = vector.broadcast %cst_30 : f32 to vector<16x128xf32>
    %73 = arith.addf %71, %72 : vector<16x128xf32>
    %74 = arith.mulf %73, %63 : vector<16x128xf32>
    %cst_31 = arith.constant 0.254829586 : f32
    %75 = vector.broadcast %cst_31 : f32 to vector<16x128xf32>
    %76 = arith.addf %74, %75 : vector<16x128xf32>
    %77 = arith.mulf %76, %63 : vector<16x128xf32>
    %cst_32 = arith.constant 0.000000e+00 : f32
    %78 = vector.broadcast %cst_32 : f32 to vector<16x128xf32>
    %79 = arith.subf %78, %57 : vector<16x128xf32>
    %80 = arith.mulf %79, %57 : vector<16x128xf32>
    %81 = math.exp %80 : vector<16x128xf32>
    %82 = arith.mulf %77, %81 : vector<16x128xf32>
    %cst_33 = arith.constant 1.000000e+00 : f32
    %83 = vector.broadcast %cst_33 : f32 to vector<16x128xf32>
    %84 = arith.subf %83, %82 : vector<16x128xf32>
    %cst_34 = arith.constant 0.000000e+00 : f32
    %85 = vector.broadcast %cst_34 : f32 to vector<16x128xf32>
    %86 = arith.cmpf olt, %56, %85 : vector<16x128xf32>
    %cst_35 = arith.constant 0.000000e+00 : f32
    %87 = vector.broadcast %cst_35 : f32 to vector<16x128xf32>
    %88 = arith.subf %87, %84 : vector<16x128xf32>
    %89 = arith.select %86, %88, %84 : vector<16x128xi1>, vector<16x128xf32>
    %cst_36 = arith.constant 1.000000e+00 : f32
    %90 = vector.broadcast %cst_36 : f32 to vector<16x128xf32>
    %91 = arith.addf %90, %89 : vector<16x128xf32>
    %92 = arith.mulf %54, %91 : vector<16x128xf32>
    %c0_37 = arith.constant 0 : index
    %c0_38 = arith.constant 0 : index
    %c0_39 = arith.constant 0 : index
    %c0_40 = arith.constant 0 : index
    %93 = vector.load %arg7[%c0_37, %c0_38, %c0_39, %c0_40] : memref<1x1x16x128xf32, #tpu.memory_space<vmem>>, vector<1x1x16x128xf32>
    %94 = vector.shape_cast %93 : vector<1x1x16x128xf32> to vector<16x128xf32>
    %95 = vector.shape_cast %92 : vector<16x128xf32> to vector<1x1x16x128xf32>
    tpu.vector_store %arg7[%c0_37, %c0_38, %c0_39, %c0_40], %95 {strides = array<i32>} : memref<1x1x16x128xf32, #tpu.memory_space<vmem>>, vector<1x1x16x128xf32>,
    return
  }
  func.func @transform_0(%arg0: i32, %arg1: i32) -> (i32, i32) {
    %c0_i32 = arith.constant 0 : i32
    %c0_i32_0 = arith.constant 0 : i32
    %c0_i32_1 = arith.constant 0 : i32
    return %c0_i32, %c0_i32_0 : i32, i32
  }
  func.func @transform_1(%arg0: i32, %arg1: i32) -> (i32, i32) {
    %c0_i32 = arith.constant 0 : i32
    %c0_i32_0 = arith.constant 0 : i32
    %c0_i32_1 = arith.constant 0 : i32
    return %c0_i32, %c0_i32_0 : i32, i32
  }
  func.func @transform_2(%arg0: i32, %arg1: i32) -> (i32, i32, i32, i32) {
    %c0_i32 = arith.constant 0 : i32
    %0 = arith.addi %arg1, %c0_i32 : i32
    %c0_i32_0 = arith.constant 0 : i32
    %c0_i32_1 = arith.constant 0 : i32
    %c0_i32_2 = arith.constant 0 : i32
    return %arg0, %0, %c0_i32_0, %c0_i32_1 : i32, i32, i32, i32
  }
  func.func @transform_3(%arg0: i32, %arg1: i32) -> (i32, i32, i32, i32) {
    %c1_i32 = arith.constant 1 : i32
    %0 = arith.addi %arg1, %c1_i32 : i32
    %c0_i32 = arith.constant 0 : i32
    %c0_i32_0 = arith.constant 0 : i32
    %c0_i32_1 = arith.constant 0 : i32
    return %arg0, %0, %c0_i32, %c0_i32_0 : i32, i32, i32, i32
  }
  func.func @transform_4(%arg0: i32, %arg1: i32) -> (i32, i32, i32, i32) {
    %c2_i32 = arith.constant 2 : i32
    %0 = arith.addi %arg1, %c2_i32 : i32
    %c0_i32 = arith.constant 0 : i32
    %c0_i32_0 = arith.constant 0 : i32
    %c0_i32_1 = arith.constant 0 : i32
    return %arg0, %0, %c0_i32, %c0_i32_0 : i32, i32, i32, i32
  }
  func.func @transform_5(%arg0: i32, %arg1: i32) -> (i32, i32, i32, i32) {
    %c0_i32 = arith.constant 0 : i32
    %c0_i32_0 = arith.constant 0 : i32
    %c0_i32_1 = arith.constant 0 : i32
    return %arg0, %arg1, %c0_i32, %c0_i32_0 : i32, i32, i32, i32
  }
}

module attributes {stable_mosaic.version = 11 : i64} {
  func.func @_mm_bias_kernel(%arg0: i32, %arg1: i32, %arg2: memref<256x128xf32, #tpu.memory_space<vmem>>, %arg3: memref<128x32xf32, #tpu.memory_space<vmem>>, %arg4: memref<1x32xf32, #tpu.memory_space<vmem>>, %arg5: memref<256x32xf32, #tpu.memory_space<vmem>>) attributes {dimension_semantics = [#tpu.dimension_semantics<parallel>, #tpu.dimension_semantics<parallel>], iteration_bounds = array<i64: 2, 1>, scalar_prefetch = 0 : i64, scratch_operands = 0 : i64, tpu.core_type = #tpu.core_type<tc>, window_params = [{transform_indices = @transform_0, window_bounds = array<i64: 256, 128>}, {transform_indices = @transform_1, window_bounds = array<i64: 128, 32>}, {transform_indices = @transform_2, window_bounds = array<i64: 1, 32>}, {transform_indices = @transform_3, window_bounds = array<i64: 256, 32>}]} {
    %c0 = arith.constant 0 : index
    %c0_0 = arith.constant 0 : index
    %0 = vector.load %arg2[%c0, %c0_0] : memref<256x128xf32, #tpu.memory_space<vmem>>, vector<256x128xf32>
    %c0_1 = arith.constant 0 : index
    %c0_2 = arith.constant 0 : index
    %1 = vector.load %arg3[%c0_1, %c0_2] : memref<128x32xf32, #tpu.memory_space<vmem>>, vector<128x32xf32>
    %cst = arith.constant dense<0.000000e+00> : vector<256x32xf32>
    %2 = tpu.matmul %0, %1, %cst {dimension_numbers = #tpu.dot_dimension_numbers<[1], [0], [0], [1], [0, 0, 1, 1], [], []>} : vector<256x128xf32>, vector<128x32xf32>, vector<256x32xf32> -> vector<256x32xf32>
    %c0_3 = arith.constant 0 : index
    %c0_4 = arith.constant 0 : index
    %3 = vector.load %arg4[%c0_3, %c0_4] : memref<1x32xf32, #tpu.memory_space<vmem>>, vector<1x32xf32>
    %4 = vector.broadcast %3 : vector<1x32xf32> to vector<256x32xf32>
    %5 = arith.addf %2, %4 : vector<256x32xf32>
    %c0_5 = arith.constant 0 : index
    %c0_6 = arith.constant 0 : index
    %6 = vector.load %arg5[%c0_5, %c0_6] : memref<256x32xf32, #tpu.memory_space<vmem>>, vector<256x32xf32>
    tpu.vector_store %arg5[%c0_5, %c0_6], %5 {strides = array<i32>} : memref<256x32xf32, #tpu.memory_space<vmem>>, vector<256x32xf32>,
    return
  }
  func.func @transform_0(%arg0: i32, %arg1: i32) -> (i32, i32) {
    %c0_i32 = arith.constant 0 : i32
    %c0_i32_0 = arith.constant 0 : i32
    return %arg0, %c0_i32 : i32, i32
  }
  func.func @transform_1(%arg0: i32, %arg1: i32) -> (i32, i32) {
    %c0_i32 = arith.constant 0 : i32
    %c0_i32_0 = arith.constant 0 : i32
    return %c0_i32, %arg1 : i32, i32
  }
  func.func @transform_2(%arg0: i32, %arg1: i32) -> (i32, i32) {
    %c0_i32 = arith.constant 0 : i32
    %c0_i32_0 = arith.constant 0 : i32
    return %c0_i32, %arg1 : i32, i32
  }
  func.func @transform_3(%arg0: i32, %arg1: i32) -> (i32, i32) {
    %c0_i32 = arith.constant 0 : i32
    return %arg0, %arg1 : i32, i32
  }
}

</mosaic_0001>

<bundles_post_ra>
// kernel: mlp_forward_depconv.3
= control target key start
LH: loop header
LB: loop body
LE: loop exit
PB: predicated region body
PF: predicated region fallthrough
CT: control target
= control target key end

     0   :  { %8 = vsyncpa [#allocation3], 0  ;;  %s1161_s0 = inlined_call_operand.hbm [shape: f32[512,32], index: 0, kind: input, shape index: {}]   ;;  %s1162_s1 = inlined_call_operand.hbm [shape: f32[32,128], index: 1, kind: input, shape index: {}]   ;;  %s1163_s2 = inlined_call_operand.vmem [shape: f32[1,128], index: 2, kind: input, shape index: {}]   ;;  %s1164_s3 = inlined_call_operand.vmem [shape: f32[512,128], index: 3, kind: output, shape index: {}]  }
   0x1   :  { %10 = vsyncpa [#allocation3 + $0x1], 0 }
   0x2   :  { %11 = vsyncpa [#allocation5], 0  ;;  %s914_s12 = smov 0   ;;  %s916_s13 = smov 0  }
   0x3   :  { %s918_s14 = smov 0   ;;  %s920_s15 = smov 0  }
   0x4   :  { %s922_s16 = smov 0   ;;  %s924_s17 = smov 0  }
   0x5 LB: > { %s645_s18 = sadd.s32 4294967295, %s889_s17   ;;  %p49_p0 = scmp.ne.s32.totalorder %s873_s13, %s869_s12  ;;  %s889_s17 = sphi %s924_s17, %s17_s17   ;;  %s885_s16 = sphi %s922_s16, %s1173_s16   ;;  %s881_s15 = sphi %s920_s15, %s1172_s15   ;;  %s877_s14 = sphi %s918_s14, %s1171_s14   ;;  %s873_s13 = sphi %s916_s13, %s1170_s13   ;;  %s869_s12 = sphi %s914_s12, %s1169_s12  }
   0x6   : > { %p944_p1 = scmp.eq.s32.totalorder %s645_s18, 0  ;;  %p647_p2 = scmp.ge.s32.totalorder %s889_s17, 1 }
   0x7   : > { %p140_p3 = scmp.lt.s32.totalorder %s889_s17, 3  ;;  %s153_s23 = sshll.u32 %s1162_s1, 4  ;;  %s154_s23 = int_to_ptr.hbm [resolvable:$true] %s153_s23 }
   0x8   : > { %p952_p4 = por %p944_p1, %p49_p0  ;;  %s891_s25 = smov [#allocation4]  }
   0x9   : > { %p959_p5 = pnand %p647_p2, %p140_p3  ;;  %s155_s26 = sshll.u32 %s891_s25, 4  ;;  %s156_s26 = int_to_ptr.vmem [resolvable:$true] %s155_s26 }
   0xa   : > { %s892_s27 = smov 128   ;;  %s893_s28 = smov 8  }
   0xb   : > { %p712_p6 = pneg %p959_p5  ;;  %s29_s29 = sadd.s32 1, %s885_s16 }
   0xc   : > { %p31_p8 = scmp.ge.s32.totalorder %s29_s29, 2  ;;  %p43_p9 = scmp.ne.s32.totalorder %s877_s14, %s873_s13 }
   0xd   : > { %p713_p7 = pnand %p712_p6, %p944_p1  ;;  %p44_p10 = scmp.eq.s32.totalorder %s889_s17, 0 }
   0xe   : > { %s1175_s29 = smov (%p31_p8, %s29_s29), 0  ;;  %s36_s30 = sadd.s32 1, %s877_s14 }
   0xf   : > { %715 = dma.hbm_to_vmem [thread:$0]  (!%p713_p7), %s154_s23, 512, %s156_s26, [#allocation5], %s892_s27, %s892_s27, %s893_s28  }
  0x10   : > { %p974_p11 = por %p44_p10, %p43_p9  ;;  %s33_s5 = ssub.s32 %s885_s16, %s1175_s29 }
  0x11   : > { %s175_s6 = sand.u32 1, %s877_s14   ;;  %p34_p12 = scmp.eq.s32.totalorder %s33_s5, 0 }
  0x12   : > { %p721_p13 = scmp.lt.s32.totalorder %s889_s17, 2  ;;  %s651_s7 = sshll.u32 %s175_s6, 8 }
  0x13   : > { %s693_s8 = sshll.u32 %s885_s16, 8  ;;  %s179_s21 = scalar_lea.vmem [#allocation2], %s651_s7 }
  0x14   : > { %s984_s9 = scalar_select %p34_p12, %s877_s14, %s36_s30  }
  0x15   : > { %s184_s12 = scalar_lea.hbm %s1161_s0, %s693_s8  ;;  %s187_s22 = sshll.u32 %s179_s21, 4  ;;  %s188_s22 = int_to_ptr.vmem [resolvable:$true] %s187_s22 }
  0x16   : > { %s185_s18 = sshll.u32 %s184_s12, 4  ;;  %p717_p0 = pnand %p721_p13, %p974_p11  ;;  %s186_s18 = int_to_ptr.hbm [resolvable:$true] %s185_s18 }
  0x17   : > { %s176_s23 = scalar_lea.sflag [#allocation3], %s175_s6  ;;  %199 = sbr.rel (%p959_p5) target bundleno = 231 (0xe7), region = 32 }
  0x18   : > { %719 = dma.hbm_to_vmem [thread:$0]  (!%p717_p0), %s186_s18, 4096, %s188_s22, %s176_s23, %s892_s27, %s892_s27, %s893_s28  }
  0x19   : > { %s201_s25 = sand.u32 (!%p959_p5), 1, %s873_s13  }
  0x1a   : > { %s655_s26 = sshll.u32 (!%p959_p5), %s201_s25, 8  ;;  %s202_s30 = scalar_lea.sflag (!%p959_p5), [#allocation3], %s201_s25 }
  0x1b   : > { %s994_s5 = scalar_lea.vmem (!%p959_p5), [#allocation2], %s655_s26 }
  0x1c   : > { %860 = dma.done.wait (%p952_p4), %s202_s30, 4096  }
  0x1d   : > { %862 = vsyncadd (%p952_p4), %s202_s30, 4294963200 }
  0x1e   : > { %864 = dma.done.wait (%p944_p1), [#allocation5], 512  }
  0x1f   : > { %866 = vsyncadd (%p944_p1), [#allocation5], 4294966784  ;;  %v288_v0 = vld [vmem:[#allocation4 + $0x18] sm:$0xff]  ;;  %v287_v1 = vld [vmem:[#allocation4 + $0x10] sm:$0xff]  ;;  %vm293_vm0 = vcmask 261120   ;;  %s657_s19 = sshll.u32 %s881_s15, 5 }
  0x20   : > { %695 = vmatpush.msra.mxu2 %v288_v0  ;;  %696 = vmatpush.msra.mxu3 %v288_v0  ;;  %v286_v2 = vld [vmem:[#allocation4 + $0x8] sm:$0xff]  ;;  %v285_v3 = vld [vmem:[#allocation4] sm:$0xff]  ;;  %v271_v12 = vld [vmem:[%s994_s5 + $0x90] sm:$0xff]  ;;  %p245_p1 = scmp.lt.s32.totalorder %s657_s19, 63 }
  0x21   : > { %402 = vmatpush.msra.mxu0 %v288_v0  ;;  %694 = vmatpush.msra.mxu1 %v288_v0  ;;  %v269_v4 = vld [vmem:[%s994_s5 + $0x80] sm:$0xff]  ;;  %v270_v8 = vld [vmem:[%s994_s5 + $0x88] sm:$0xff]  ;;  %v279_v13 = vld [vmem:[%s994_s5 + $0xd0] sm:$0xff] }
  0x22   : > { %698 = vmatpush.msra.mxu2 %v287_v1  ;;  %699 = vmatpush.msra.mxu3 %v287_v1  ;;  %v277_v5 = vld [vmem:[%s994_s5 + $0xc0] sm:$0xff]  ;;  %v278_v9 = vld [vmem:[%s994_s5 + $0xc8] sm:$0xff]  ;;  %v255_v14 = vld [vmem:[%s994_s5 + $0x10] sm:$0xff]  ;;  %s1177_s19 = smov (!%p245_p1, %s657_s19), 63 }
  0x23   : > { %403 = vmatpush.msra.mxu0 %v287_v1  ;;  %697 = vmatpush.msra.mxu1 %v287_v1  ;;  %v253_v6 = vld [vmem:[%s994_s5] sm:$0xff]  ;;  %v254_v10 = vld [vmem:[%s994_s5 + $0x8] sm:$0xff]  ;;  %v263_v15 = vld [vmem:[%s994_s5 + $0x50] sm:$0xff]  ;;  %s658_s20 = sshll.u32 %s1177_s19, 3 }
  0x24   : > { %701 = vmatpush.msra.mxu2 %v286_v2  ;;  %702 = vmatpush.msra.mxu3 %v286_v2  ;;  %v261_v7 = vld [vmem:[%s994_s5 + $0x40] sm:$0xff]  ;;  %v262_v11 = vld [vmem:[%s994_s5 + $0x48] sm:$0xff]  ;;  %v272_v16 = vld [vmem:[%s994_s5 + $0x98] sm:$0xff]  ;;  %s1077_s6 = scalar_lea.vmem %s1164_s3, %s658_s20 }
  0x25   : > { %404 = vmatpush.msra.mxu0 %v286_v2  ;;  %700 = vmatpush.msra.mxu1 %v286_v2  ;;  %v280_v17 = vld [vmem:[%s994_s5 + $0xd8] sm:$0xff]  ;;  %v273_v20 = vld [vmem:[%s994_s5 + $0xa0] sm:$0xff]  ;;  %v274_v24 = vld [vmem:[%s994_s5 + $0xa8] sm:$0xff] }
  0x26   : > { %704 = vmatpush.msra.mxu2 %v285_v3  ;;  %705 = vmatpush.msra.mxu3 %v285_v3  ;;  %v256_v18 = vld [vmem:[%s994_s5 + $0x18] sm:$0xff]  ;;  %v281_v21 = vld [vmem:[%s994_s5 + $0xe0] sm:$0xff]  ;;  %v282_v25 = vld [vmem:[%s994_s5 + $0xe8] sm:$0xff] }
  0x27   : > { %675 = vmatmul.msk.f32.vlgmr.msra.gmra.mxu2 %vm293_vm0, %v269_v4  ;;  %683 = vmatmul.msk.f32.vlgmr.msra.gmra.mxu3 %vm293_vm0, %v277_v5  ;;  %v264_v19 = vld [vmem:[%s994_s5 + $0x58] sm:$0xff]  ;;  %v257_v22 = vld [vmem:[%s994_s5 + $0x20] sm:$0xff]  ;;  %v258_v26 = vld [vmem:[%s994_s5 + $0x28] sm:$0xff] }
  0x28   : > { %405 = vmatpush.msra.mxu0 %v285_v3  ;;  %703 = vmatpush.msra.mxu1 %v285_v3  ;;  %v265_v23 = vld [vmem:[%s994_s5 + $0x60] sm:$0xff]  ;;  %v266_v27 = vld [vmem:[%s994_s5 + $0x68] sm:$0xff]  ;;  %v275_v28 = vld [vmem:[%s994_s5 + $0xb0] sm:$0xff] }
  0x29   : > { %659 = vmatmul.msk.f32.vlgmr.msra.gmra.mxu0 %vm293_vm0, %v253_v6  ;;  %667 = vmatmul.msk.f32.vlgmr.msra.gmra.mxu1 %vm293_vm0, %v261_v7  ;;  %v283_v29 = vld [vmem:[%s994_s5 + $0xf0] sm:$0xff]  ;;  %v276_v32 = vld [vmem:[%s994_s5 + $0xb8] sm:$0xff]  ;;  %v1072_v36 = vld [vmem:[%s1163_s2] ss:$0 sm:$0xff] }
  0x2a   : > { %v259_v30 = vld [vmem:[%s994_s5 + $0x30] sm:$0xff]  ;;  %v284_v33 = vld [vmem:[%s994_s5 + $0xf8] sm:$0xff] }
  0x2b   : > { %v267_v31 = vld [vmem:[%s994_s5 + $0x70] sm:$0xff]  ;;  %v260_v34 = vld [vmem:[%s994_s5 + $0x38] sm:$0xff] }
  0x2c   : > { %v268_v35 = vld [vmem:[%s994_s5 + $0x78] sm:$0xff] }
  0x2f   : > { %676 = vmatmul.msk.f32.gmra.mxu2 %vm293_vm0, %v270_v8  ;;  %684 = vmatmul.msk.f32.gmra.mxu3 %vm293_vm0, %v278_v9 }
  0x31   : > { %660 = vmatmul.msk.f32.gmra.mxu0 %vm293_vm0, %v254_v10  ;;  %668 = vmatmul.msk.f32.gmra.mxu1 %vm293_vm0, %v262_v11 }
  0x37   : > { %677 = vmatmul.msk.f32.gmra.mxu2 %vm293_vm0, %v271_v12  ;;  %685 = vmatmul.msk.f32.gmra.mxu3 %vm293_vm0, %v279_v13 }
  0x39   : > { %661 = vmatmul.msk.f32.gmra.mxu0 %vm293_vm0, %v255_v14  ;;  %669 = vmatmul.msk.f32.gmra.mxu1 %vm293_vm0, %v263_v15 }
  0x3f   : > { %678 = vmatmul.msk.f32.gmra.mxu2 %vm293_vm0, %v272_v16  ;;  %686 = vmatmul.msk.f32.gmra.mxu3 %vm293_vm0, %v280_v17 }
  0x41   : > { %662 = vmatmul.msk.f32.gmra.mxu0 %vm293_vm0, %v256_v18  ;;  %670 = vmatmul.msk.f32.gmra.mxu1 %vm293_vm0, %v264_v19 }
  0x47   : > { %679 = vmatmul.msk.f32.gmra.mxu2 %vm293_vm0, %v273_v20  ;;  %687 = vmatmul.msk.f32.gmra.mxu3 %vm293_vm0, %v281_v21 }
  0x49   : > { %663 = vmatmul.msk.f32.gmra.mxu0 %vm293_vm0, %v257_v22  ;;  %671 = vmatmul.msk.f32.gmra.mxu1 %vm293_vm0, %v265_v23 }
  0x4f   : > { %680 = vmatmul.msk.f32.gmra.mxu2 %vm293_vm0, %v274_v24  ;;  %688 = vmatmul.msk.f32.gmra.mxu3 %vm293_vm0, %v282_v25 }
  0x51   : > { %664 = vmatmul.msk.f32.gmra.mxu0 %vm293_vm0, %v258_v26  ;;  %672 = vmatmul.msk.f32.gmra.mxu1 %vm293_vm0, %v266_v27 }
  0x57   : > { %681 = vmatmul.msk.f32.gmra.mxu2 %vm293_vm0, %v275_v28  ;;  %689 = vmatmul.msk.f32.gmra.mxu3 %vm293_vm0, %v283_v29 }
  0x59   : > { %665 = vmatmul.msk.f32.gmra.mxu0 %vm293_vm0, %v259_v30  ;;  %673 = vmatmul.msk.f32.gmra.mxu1 %vm293_vm0, %v267_v31 }
  0x5f   : > { %682 = vmatmul.msk.f32.gmra.mxu2 %vm293_vm0, %v276_v32  ;;  %690 = vmatmul.msk.f32.gmra.mxu3 %vm293_vm0, %v284_v33 }
  0x61   : > { %666 = vmatmul.msk.f32.gmra.mxu0 %vm293_vm0, %v260_v34  ;;  %674 = vmatmul.msk.f32.gmra.mxu1 %vm293_vm0, %v268_v35 }
  0xa6   : > { %v407_v37 = vpop.f32.mrf.mxu0  ;;  %v431_v38 = vpop.f32.mrf.mxu1 }
  0xa7   : > { %v408_v39 = vadd.f32 %v1072_v36, %v407_v37  ;;  %v432_v40 = vadd.f32 %v1072_v36, %v431_v38 }
  0xa9   : > { %503 = vst [vmem:[%s1077_s6] sm:$0xff] %v408_v39 }
  0xaa   : > { %511 = vst [vmem:[%s1077_s6 + $0x40] sm:$0xff] %v432_v40  ;;  %v455_v41 = vpop.f32.mrf.mxu2  ;;  %v479_v42 = vpop.f32.mrf.mxu3 }
  0xab   : > { %v456_v43 = vadd.f32 %v1072_v36, %v455_v41  ;;  %v480_v44 = vadd.f32 %v1072_v36, %v479_v42 }
  0xad   : > { %519 = vst [vmem:[%s1077_s6 + $0x80] sm:$0xff] %v456_v43 }
  0xae   : > { %527 = vst [vmem:[%s1077_s6 + $0xc0] sm:$0xff] %v480_v44  ;;  %v410_v45 = vpop.f32.mrf.mxu0  ;;  %v434_v46 = vpop.f32.mrf.mxu1 }
  0xaf   : > { %v411_v47 = vadd.f32 %v1072_v36, %v410_v45  ;;  %v435_v48 = vadd.f32 %v1072_v36, %v434_v46 }
  0xb1   : > { %504 = vst [vmem:[%s1077_s6 + $0x8] sm:$0xff] %v411_v47 }
  0xb2   : > { %512 = vst [vmem:[%s1077_s6 + $0x48] sm:$0xff] %v435_v48  ;;  %v458_v49 = vpop.f32.mrf.mxu2  ;;  %v482_v50 = vpop.f32.mrf.mxu3 }
  0xb3   : > { %v459_v51 = vadd.f32 %v1072_v36, %v458_v49  ;;  %v483_v52 = vadd.f32 %v1072_v36, %v482_v50 }
  0xb5   : > { %520 = vst [vmem:[%s1077_s6 + $0x88] sm:$0xff] %v459_v51 }
  0xb6   : > { %528 = vst [vmem:[%s1077_s6 + $0xc8] sm:$0xff] %v483_v52  ;;  %v413_v53 = vpop.f32.mrf.mxu0  ;;  %v437_v54 = vpop.f32.mrf.mxu1 }
  0xb7   : > { %v414_v55 = vadd.f32 %v1072_v36, %v413_v53  ;;  %v438_v56 = vadd.f32 %v1072_v36, %v437_v54 }
  0xb9   : > { %505 = vst [vmem:[%s1077_s6 + $0x10] sm:$0xff] %v414_v55 }
  0xba   : > { %513 = vst [vmem:[%s1077_s6 + $0x50] sm:$0xff] %v438_v56  ;;  %v461_v57 = vpop.f32.mrf.mxu2  ;;  %v485_v58 = vpop.f32.mrf.mxu3 }
  0xbb   : > { %v462_v59 = vadd.f32 %v1072_v36, %v461_v57  ;;  %v486_v60 = vadd.f32 %v1072_v36, %v485_v58 }
  0xbd   : > { %521 = vst [vmem:[%s1077_s6 + $0x90] sm:$0xff] %v462_v59 }
  0xbe   : > { %529 = vst [vmem:[%s1077_s6 + $0xd0] sm:$0xff] %v486_v60  ;;  %v416_v61 = vpop.f32.mrf.mxu0  ;;  %v440_v62 = vpop.f32.mrf.mxu1 }
  0xbf   : > { %v417_v63 = vadd.f32 %v1072_v36, %v416_v61  ;;  %v441_v0 = vadd.f32 %v1072_v36, %v440_v62 }
  0xc1   : > { %506 = vst [vmem:[%s1077_s6 + $0x18] sm:$0xff] %v417_v63 }
  0xc2   : > { %514 = vst [vmem:[%s1077_s6 + $0x58] sm:$0xff] %v441_v0  ;;  %v464_v1 = vpop.f32.mrf.mxu2  ;;  %v488_v2 = vpop.f32.mrf.mxu3 }
  0xc3   : > { %v465_v3 = vadd.f32 %v1072_v36, %v464_v1  ;;  %v489_v4 = vadd.f32 %v1072_v36, %v488_v2 }
  0xc5   : > { %522 = vst [vmem:[%s1077_s6 + $0x98] sm:$0xff] %v465_v3 }
  0xc6   : > { %530 = vst [vmem:[%s1077_s6 + $0xd8] sm:$0xff] %v489_v4  ;;  %v419_v5 = vpop.f32.mrf.mxu0  ;;  %v443_v6 = vpop.f32.mrf.mxu1 }
  0xc7   : > { %v420_v7 = vadd.f32 %v1072_v36, %v419_v5  ;;  %v444_v8 = vadd.f32 %v1072_v36, %v443_v6 }
  0xc9   : > { %507 = vst [vmem:[%s1077_s6 + $0x20] sm:$0xff] %v420_v7 }
  0xca   : > { %515 = vst [vmem:[%s1077_s6 + $0x60] sm:$0xff] %v444_v8  ;;  %v467_v9 = vpop.f32.mrf.mxu2  ;;  %v491_v10 = vpop.f32.mrf.mxu3 }
  0xcb   : > { %v468_v11 = vadd.f32 %v1072_v36, %v467_v9  ;;  %v492_v12 = vadd.f32 %v1072_v36, %v491_v10 }
  0xcd   : > { %523 = vst [vmem:[%s1077_s6 + $0xa0] sm:$0xff] %v468_v11 }
  0xce   : > { %531 = vst [vmem:[%s1077_s6 + $0xe0] sm:$0xff] %v492_v12  ;;  %v422_v13 = vpop.f32.mrf.mxu0  ;;  %v446_v14 = vpop.f32.mrf.mxu1 }
  0xcf   : > { %v423_v15 = vadd.f32 %v1072_v36, %v422_v13  ;;  %v447_v16 = vadd.f32 %v1072_v36, %v446_v14 }
  0xd1   : > { %508 = vst [vmem:[%s1077_s6 + $0x28] sm:$0xff] %v423_v15 }
  0xd2   : > { %516 = vst [vmem:[%s1077_s6 + $0x68] sm:$0xff] %v447_v16  ;;  %v470_v17 = vpop.f32.mrf.mxu2  ;;  %v494_v18 = vpop.f32.mrf.mxu3 }
  0xd3   : > { %v471_v19 = vadd.f32 %v1072_v36, %v470_v17  ;;  %v495_v20 = vadd.f32 %v1072_v36, %v494_v18 }
  0xd5   : > { %524 = vst [vmem:[%s1077_s6 + $0xa8] sm:$0xff] %v471_v19 }
  0xd6   : > { %532 = vst [vmem:[%s1077_s6 + $0xe8] sm:$0xff] %v495_v20  ;;  %v425_v21 = vpop.f32.mrf.mxu0  ;;  %v449_v22 = vpop.f32.mrf.mxu1 }
  0xd7   : > { %v426_v23 = vadd.f32 %v1072_v36, %v425_v21  ;;  %v450_v24 = vadd.f32 %v1072_v36, %v449_v22 }
  0xd9   : > { %509 = vst [vmem:[%s1077_s6 + $0x30] sm:$0xff] %v426_v23 }
  0xda   : > { %517 = vst [vmem:[%s1077_s6 + $0x70] sm:$0xff] %v450_v24  ;;  %v473_v25 = vpop.f32.mrf.mxu2  ;;  %v497_v26 = vpop.f32.mrf.mxu3 }
  0xdb   : > { %v474_v27 = vadd.f32 %v1072_v36, %v473_v25  ;;  %v498_v28 = vadd.f32 %v1072_v36, %v497_v26 }
  0xdd   : > { %525 = vst [vmem:[%s1077_s6 + $0xb0] sm:$0xff] %v474_v27 }
  0xde   : > { %533 = vst [vmem:[%s1077_s6 + $0xf0] sm:$0xff] %v498_v28  ;;  %v428_v29 = vpop.f32.mrf.mxu0  ;;  %v452_v30 = vpop.f32.mrf.mxu1 }
  0xdf   : > { %v429_v31 = vadd.f32 %v1072_v36, %v428_v29  ;;  %v453_v32 = vadd.f32 %v1072_v36, %v452_v30 }
  0xe1   : > { %510 = vst [vmem:[%s1077_s6 + $0x38] sm:$0xff] %v429_v31 }
  0xe2   : > { %518 = vst [vmem:[%s1077_s6 + $0x78] sm:$0xff] %v453_v32  ;;  %v476_v33 = vpop.f32.mrf.mxu2  ;;  %v500_v34 = vpop.f32.mrf.mxu3 }
  0xe3   : > { %v477_v35 = vadd.f32 %v1072_v36, %v476_v33  ;;  %v501_v37 = vadd.f32 %v1072_v36, %v500_v34 }
  0xe5   : > { %526 = vst [vmem:[%s1077_s6 + $0xb8] sm:$0xff] %v477_v35 }
  0xe6   : > { %534 = vst [vmem:[%s1077_s6 + $0xf8] sm:$0xff] %v501_v37 }
  0xe7 PF: > { %s17_s17 = sadd.s32 1, %s889_s17   ;;  %s1169_s12 = smov %s873_s13 }
  0xe8   : > { %p14_p2 = scmp.ge.s32.totalorder %s17_s17, 4   ;;  %s1170_s13 = smov %s877_s14 }
  0xe9   : > { %s1171_s14 = smov %s984_s9  ;;  %s1172_s15 = smov %s885_s16 }
  0xea   : > { %s1173_s16 = smov %s1175_s29  ;;  %16 = sbr.rel (!%p14_p2) target bundleno = 5 (0x5), region = 80 }
  0xef   :  { %563 = vsyncpa [#allocation3], 1 }
  0xf0   :  { %565 = vsyncpa [#allocation3 + $0x1], 1 }
  0xf1   :  { %566 = vsyncpa [#allocation5], 1 }

// kernel: mlp_forward_depconv.4
= control target key start
LH: loop header
LB: loop body
LE: loop exit
PB: predicated region body
PF: predicated region fallthrough
CT: control target
= control target key end

     0   :  { %s842_s18 = smov 0   ;;  %s844_s19 = smov 0   ;;  %s980_s0 = inlined_call_operand.vmem [shape: f32[9,128], index: 0, kind: input, shape index: {}]   ;;  %s981_s1 = inlined_call_operand.vmem [shape: f32[1,128], index: 1, kind: input, shape index: {}]   ;;  %s982_s2 = inlined_call_operand.vmem [shape: f32[2,18,18,128], index: 2, kind: input, shape index: {}, may-alias: {2,3,4}]   ;;  %s983_s3 = inlined_call_operand.vmem [shape: f32[2,18,18,128], index: 3, kind: input, shape index: {}, may-alias: {2,3,4}]   ;;  %s984_s4 = inlined_call_operand.vmem [shape: f32[2,18,18,128], index: 4, kind: input, shape index: {}, may-alias: {2,3,4}]   ;;  %s985_s5 = inlined_call_operand.vmem [shape: f32[2,16,16,128], index: 5, kind: output, shape index: {}]  }
   0x1   :  { %s846_s20 = smov 0   ;;  %s848_s21 = smov 0  }
   0x2   :  { %s850_s22 = smov 0  }
   0x3 LB: > { %s24_s23 = sadd.s32 1, %s802_s20  ;;  %s27_s24 = sadd.s32 1, %s806_s21  ;;  %s810_s22 = sphi %s850_s22, %s15_s22   ;;  %s806_s21 = sphi %s848_s21, %s990_s21   ;;  %s802_s20 = sphi %s846_s20, %s989_s20   ;;  %s798_s19 = sphi %s844_s19, %s988_s19   ;;  %s794_s18 = sphi %s842_s18, %s987_s18  }
   0x4   : > { %p25_p0 = scmp.ge.s32.totalorder %s24_s23, 16  ;;  %p701_p1 = scmp.ge.s32.totalorder %s810_s22, 1 }
   0x5   : > { %p247_p2 = scmp.lt.s32.totalorder %s810_s22, 33 }
   0x6   : > { %s992_s23 = smov (%p25_p0, %s24_s23), 0  ;;  %s994_s24 = smov (!%p25_p0, %s27_s24), %s806_s21 }
   0x7   : > { %p248_p3 = pnand %p701_p1, %p247_p2  ;;  %p29_p4 = scmp.ge.s32.totalorder %s994_s24, 2 }
   0x8   : > { %p303_p5 = scmp.lt.s32.totalorder (!%p248_p3), %s798_s19, 1  ;;  %p305_p6 = scmp.lt.s32.totalorder (!%p248_p3), %s794_s18, 17 }
   0x9   : > { %s996_s24 = smov (%p29_p4, %s994_s24), 0  ;;  %251 = sbr.rel (%p248_p3) target bundleno = 100 (0x64), region = 40 }
   0xa   : > { %s312_s25 = sadd.s32 (!%p248_p3), 1, %s794_s18  ;;  %s323_s29 = sadd.s32 (!%p248_p3), 2, %s794_s18 }
   0xb   : > { %p315_p7 = scmp.lt.s32.totalorder (!%p248_p3), %s312_s25, 17  ;;  %p896_p8 = scmp.lt.s32.totalorder (!%p248_p3), %s323_s29, 17 }
   0xc   : > { %p336_p9 = scmp.lt.s32.totalorder (!%p248_p3), %s794_s18, 15 }
   0xe   : > { %s998_s19 = smov (!%p303_p5, %s798_s19), 1  ;;  %s1000_s25 = smov (!%p315_p7, %s312_s25), 17  ;;  %v754_v0 = vld [vmem:[%s980_s0] ss:$0 sm:$0xff]  ;;  %v756_v1 = vld [vmem:[%s980_s0 + $0x1] ss:$0 sm:$0xff] }
   0xf   : > { %s306_s26 = scalar_select %p305_p6, %s794_s18, 17  ;;  %v757_v2 = vld [vmem:[%s980_s0 + $0x2] ss:$0 sm:$0xff]  ;;  %v755_v3 = vld [vmem:[%s981_s1] ss:$0 sm:$0xff]  ;;  %vm370_vm0 = vcmask 1046528  }
  0x10   : > { %s880_s27 = smul.u32 54, %s998_s19  ;;  %vm388_vm1 = vcmask 1045504   ;;  %v758_v11 = vld [vmem:[%s980_s0 + $0x3] ss:$0 sm:$0xff]  ;;  %v759_v12 = vld [vmem:[%s980_s0 + $0x4] ss:$0 sm:$0xff] }
  0x11   : > { %s710_s28 = smul.u32 3, %s306_s26  ;;  %s1002_s29 = smov (!%p896_p8, %s323_s29), 17  ;;  %v760_v22 = vld [vmem:[%s980_s0 + $0x5] ss:$0 sm:$0xff]  ;;  %v761_v40 = vld [vmem:[%s980_s0 + $0x6] ss:$0 sm:$0xff] }
  0x12   : > { %s712_s11 = smul.u32 3, %s1000_s25  ;;  %v762_v45 = vld [vmem:[%s980_s0 + $0x7] ss:$0 sm:$0xff]  ;;  %v763_v55 = vld [vmem:[%s980_s0 + $0x8] ss:$0 sm:$0xff]  ;;  %s1004_s18 = smov (!%p336_p9, %s794_s18), 15 }
  0x13   : > { %s309_s30 = sadd.s32 %s880_s27, %s710_s28  ;;  %s713_s15 = smul.u32 3, %s1002_s29 }
  0x14   : > { %s702_s10 = sshll.u32 %s309_s30, 3  ;;  %s319_s6 = sadd.s32 %s712_s11, %s880_s27 }
  0x15   : > { %s311_s16 = scalar_lea.vmem %s982_s2, %s702_s10  ;;  %s703_s25 = sshll.u32 %s319_s6, 3 }
  0x16   : > { %v343_v4 = vld [vmem:[%s311_s16] sm:$0xff]  ;;  %v344_v5 = vld [vmem:[%s311_s16 + $0x8] sm:$0xff]  ;;  %v345_v6 = vld [vmem:[%s311_s16 + $0x10] sm:$0x3]  ;;  %s321_s12 = scalar_lea.vmem %s983_s3, %s703_s25  ;;  %s330_s16 = sadd.s32 %s713_s15, %s880_s27 }
  0x17   : > { %v355_v7 = vmul.f32 %v754_v0, %v343_v4  ;;  %v356_v8 = vmul.f32 %v754_v0, %v344_v5  ;;  %v364_v9 = vmul.f32 %v756_v1, %v343_v4  ;;  %v365_v10 = vmul.f32 %v756_v1, %v344_v5  ;;  %v346_v17 = vld [vmem:[%s321_s12] sm:$0xff]  ;;  %v347_v18 = vld [vmem:[%s321_s12 + $0x8] sm:$0xff]  ;;  %v348_v23 = vld [vmem:[%s321_s12 + $0x10] sm:$0x3]  ;;  %s704_s29 = sshll.u32 %s330_s16, 3  ;;  %s705_s9 = sshll.u32 %s1004_s18, 1 }
  0x18   : > { %v366_v13 = vmul.f32 %v756_v1, %v345_v6  ;;  %v382_v14 = vmul.f32 %v757_v2, %v343_v4  ;;  %v383_v15 = vmul.f32 %v757_v2, %v344_v5  ;;  %v384_v16 = vmul.f32 %v757_v2, %v345_v6  ;;  %s332_s30 = scalar_lea.vmem %s984_s4, %s704_s29  ;;  %s706_s10 = sshll.u32 %s998_s19, 5 }
  0x19   : > { %v360_v19 = vadd.f32 %v755_v3, %v355_v7  ;;  %v361_v20 = vadd.f32 %v755_v3, %v356_v8  ;;  %v371_v21 = vrot.slane %v364_v9, 1  ;;  %v372_v24 = vrot.slane %v365_v10, 1  ;;  %v349_v50 = vld [vmem:[%s332_s30] sm:$0xff]  ;;  %v350_v51 = vld [vmem:[%s332_s30 + $0x8] sm:$0xff]  ;;  %v351_v56 = vld [vmem:[%s332_s30 + $0x10] sm:$0x3]  ;;  %s340_s11 = sadd.s32 %s706_s10, %s705_s9 }
  0x1a   : > { %v374_v25 = vrot.slane %v366_v13, 1  ;;  %v389_v26 = vrot.slane %v382_v14, 2  ;;  %v390_v27 = vrot.slane %v383_v15, 2  ;;  %v392_v28 = vrot.slane %v384_v16, 2  ;;  %s707_s12 = sshll.u32 %s340_s11, 3 }
  0x1b   : > { %v400_v29 = vmul.f32 %v758_v11, %v346_v17  ;;  %v401_v30 = vmul.f32 %v758_v11, %v347_v18  ;;  %v406_v31 = vmul.f32 %v759_v12, %v346_v17  ;;  %v373_v32 = vsel %vm370_vm0, %v371_v21, %v372_v24  ;;  %s342_s13 = scalar_lea.vmem %s985_s5, %s707_s12 }
  0x1c   : > { %v375_v33 = vsel %vm370_vm0, %v372_v24, %v374_v25  ;;  %v391_v34 = vsel %vm388_vm1, %v389_v26, %v390_v27  ;;  %v407_v35 = vmul.f32 %v759_v12, %v347_v18  ;;  %v378_v36 = vadd.f32 %v373_v32, %v360_v19 }
  0x1d   : > { %v379_v37 = vadd.f32 %v375_v33, %v361_v20  ;;  %v393_v38 = vsel %vm388_vm1, %v390_v27, %v392_v28  ;;  %v408_v39 = vmul.f32 %v759_v12, %v348_v23  ;;  %v412_v41 = vrot.slane %v406_v31, 1 }
  0x1e   : > { %v413_v42 = vrot.slane %v407_v35, 1  ;;  %v423_v43 = vmul.f32 %v760_v22, %v346_v17  ;;  %v424_v44 = vmul.f32 %v760_v22, %v347_v18  ;;  %v396_v46 = vadd.f32 %v391_v34, %v378_v36 }
  0x1f   : > { %v397_v47 = vadd.f32 %v393_v38, %v379_v37  ;;  %v415_v48 = vrot.slane %v408_v39, 1  ;;  %v425_v49 = vmul.f32 %v760_v22, %v348_v23  ;;  %v440_v62 = vmul.f32 %v761_v40, %v349_v50 }
  0x20   : > { %v414_v52 = vsel %vm370_vm0, %v412_v41, %v413_v42  ;;  %v429_v53 = vrot.slane %v423_v43, 2  ;;  %v430_v54 = vrot.slane %v424_v44, 2  ;;  %v402_v57 = vadd.f32 %v400_v29, %v396_v46 }
  0x21   : > { %v403_v58 = vadd.f32 %v401_v30, %v397_v47  ;;  %v416_v59 = vsel %vm370_vm0, %v413_v42, %v415_v48  ;;  %v432_v60 = vrot.slane %v425_v49, 2  ;;  %v441_v63 = vmul.f32 %v761_v40, %v350_v51 }
  0x22   : > { %v431_v61 = vsel %vm388_vm1, %v429_v53, %v430_v54  ;;  %v446_v0 = vmul.f32 %v762_v45, %v349_v50  ;;  %v419_v1 = vadd.f32 %v414_v52, %v402_v57  ;;  %v447_v4 = vmul.f32 %v762_v45, %v350_v51 }
  0x23   : > { %v420_v2 = vadd.f32 %v416_v59, %v403_v58  ;;  %v433_v3 = vsel %vm388_vm1, %v430_v54, %v432_v60  ;;  %v448_v5 = vmul.f32 %v762_v45, %v351_v56  ;;  %v463_v7 = vmul.f32 %v763_v55, %v349_v50 }
  0x24   : > { %v452_v6 = vrot.slane %v446_v0, 1  ;;  %v464_v8 = vmul.f32 %v763_v55, %v350_v51  ;;  %v436_v9 = vadd.f32 %v431_v61, %v419_v1  ;;  %v453_v11 = vrot.slane %v447_v4, 1 }
  0x25   : > { %v437_v10 = vadd.f32 %v433_v3, %v420_v2  ;;  %v465_v12 = vmul.f32 %v763_v55, %v351_v56  ;;  %v455_v13 = vrot.slane %v448_v5, 1  ;;  %v469_v14 = vrot.slane %v463_v7, 2 }
  0x26   : > { %v470_v15 = vrot.slane %v464_v8, 2  ;;  %v442_v16 = vadd.f32 %v440_v62, %v436_v9  ;;  %v454_v18 = vsel %vm370_vm0, %v452_v6, %v453_v11 }
  0x27   : > { %v443_v17 = vadd.f32 %v441_v63, %v437_v10  ;;  %v472_v19 = vrot.slane %v465_v12, 2  ;;  %v456_v20 = vsel %vm370_vm0, %v453_v11, %v455_v13 }
  0x28   : > { %v471_v21 = vsel %vm388_vm1, %v469_v14, %v470_v15  ;;  %v459_v22 = vadd.f32 %v454_v18, %v442_v16 }
  0x29   : > { %v460_v23 = vadd.f32 %v456_v20, %v443_v17  ;;  %v473_v24 = vsel %vm388_vm1, %v470_v15, %v472_v19 }
  0x2a   : > { %v943_v25 = vadd.f32 %v471_v21, %v459_v22 }
  0x2b   : > { %v945_v26 = vadd.f32 %v473_v24, %v460_v23 }
  0x2c   : > { %v948_v27 = vmul.f32 0.70710677, %v943_v25  ;;  %v478_v22 = vmul.f32 0.5, %v943_v25 }
  0x2d   : > { %v951_v28 = vmul.f32 0.70710677, %v945_v26  ;;  %v479_v24 = vmul.f32 0.5, %v945_v26 }
  0x2e   : > { %v482_v29 = vand.u32 2147483647, %v948_v27  ;;  %vm548_vm10 = vcmp.lt.f32.partialorder %v948_v27, 0.0 }
  0x2f   : > { %v483_v30 = vand.u32 2147483647, %v951_v28  ;;  %vm549_vm11 = vcmp.lt.f32.partialorder %v951_v28, 0.0 }
  0x30   : > { %v484_v31 = vmul.f32 0.3275911, %v482_v29  ;;  %v536_v51 = vsub.f32 0.0, %v482_v29 }
  0x31   : > { %v485_v32 = vmul.f32 0.3275911, %v483_v30  ;;  %v537_v53 = vsub.f32 0.0, %v483_v30 }
  0x32   : > { %v486_v33 = vadd.f32 1.0, %v484_v31  ;;  %v538_v59 = vmul.f32 %v536_v51, %v482_v29 }
  0x33   : > { %v487_v34 = vadd.f32 1.0, %v485_v32  ;;  %v539_v61 = vmul.f32 %v537_v53, %v483_v30 }
  0x34   : > { %764 = vrcp.f32 %v486_v33  ;;  %vm493_vm2 = vweird.f32 %v486_v33  ;;  %v499_v38 = vand.u32 2147483648, %v486_v33  ;;  %v497_v41 = vand.u32 2147483647, %v486_v33 }
  0x35   : > { %766 = vrcp.f32 %v487_v34  ;;  %v514_v42 = vand.u32 2147483648, %v487_v34  ;;  %vm508_vm4 = vweird.f32 %v487_v34  ;;  %v512_v44 = vand.u32 2147483647, %v487_v34 }
  0x36   : > { %v500_v46 = vor.u32 1.1754944e-38, %v499_v38  ;;  %vm498_vm7 = vcmp.eq.f32.partialorder %v497_v41, 8.507059e+37  ;;  %v540_v1 = vmul.f32 1.442695, %v538_v59  ;;  %v542_v3 = vmul.f32 1.442695, %v539_v61 }
  0x37   : > { %v515_v49 = vor.u32 1.1754944e-38, %v514_v42  ;;  %vm513_vm9 = vcmp.eq.f32.partialorder %v512_v44, 8.507059e+37 }
  0x38   : > { %768 = vpow2.f32 %v540_v1 }
  0x39   : > { %770 = vpow2.f32 %v542_v3 }
  0x3a   : > { %v765_v35 = vpop.eup %764 }
  0x3b   : > { %v767_v36 = vpop.eup %766  ;;  %v489_v37 = vmul.f32 %v765_v35, %v486_v33  ;;  %vm494_vm3 = vweird.f32 %v765_v35 }
  0x3c   : > { %v504_v39 = vmul.f32 %v767_v36, %v487_v34  ;;  %vm509_vm5 = vweird.f32 %v767_v36  ;;  %vm495_vm6 = vmor %vm493_vm2, %vm494_vm3 }
  0x3d   : > { %v490_v40 = vsub.f32 1.0, %v489_v37  ;;  %vm510_vm8 = vmor %vm508_vm4, %vm509_vm5 }
  0x3e   : > { %v505_v43 = vsub.f32 1.0, %v504_v39  ;;  %v769_v12 = vpop.eup %768 }
  0x3f   : > { %v491_v45 = vmul.f32 %v765_v35, %v490_v40  ;;  %v771_v14 = vpop.eup %770 }
  0x40   : > { %v506_v47 = vmul.f32 %v767_v36, %v505_v43 }
  0x41   : > { %v492_v48 = vadd.f32 %v765_v35, %v491_v45 }
  0x42   : > { %v507_v50 = vadd.f32 %v767_v36, %v506_v47 }
  0x43   : > { %v496_v52 = vsel %vm495_vm6, %v765_v35, %v492_v48 }
  0x44   : > { %v501_v54 = vsel %vm498_vm7, %v500_v46, %v496_v52  ;;  %v511_v55 = vsel %vm510_vm8, %v767_v36, %v507_v50 }
  0x45   : > { %v516_v56 = vsel %vm513_vm9, %v515_v49, %v511_v55  ;;  %v518_v57 = vmul.f32 1.0614054, %v501_v54 }
  0x46   : > { %v519_v58 = vmul.f32 1.0614054, %v516_v56 }
  0x47   : > { %v520_v60 = vadd.f32 -1.4531521, %v518_v57 }
  0x48   : > { %v521_v62 = vadd.f32 -1.4531521, %v519_v58 }
  0x49   : > { %v522_v63 = vmul.f32 %v520_v60, %v501_v54 }
  0x4a   : > { %v523_v0 = vmul.f32 %v521_v62, %v516_v56 }
  0x4b   : > { %v524_v2 = vadd.f32 1.4214138, %v522_v63 }
  0x4c   : > { %v525_v4 = vadd.f32 1.4214138, %v523_v0 }
  0x4d   : > { %v526_v5 = vmul.f32 %v524_v2, %v501_v54 }
  0x4e   : > { %v527_v6 = vmul.f32 %v525_v4, %v516_v56 }
  0x4f   : > { %v528_v7 = vadd.f32 -0.28449672, %v526_v5 }
  0x50   : > { %v529_v8 = vadd.f32 -0.28449672, %v527_v6 }
  0x51   : > { %v530_v9 = vmul.f32 %v528_v7, %v501_v54 }
  0x52   : > { %v531_v10 = vmul.f32 %v529_v8, %v516_v56 }
  0x53   : > { %v532_v11 = vadd.f32 0.2548296, %v530_v9 }
  0x54   : > { %v533_v13 = vadd.f32 0.2548296, %v531_v10 }
  0x55   : > { %v534_v15 = vmul.f32 %v532_v11, %v501_v54 }
  0x56   : > { %v535_v16 = vmul.f32 %v533_v13, %v516_v56 }
  0x57   : > { %v544_v17 = vmul.f32 %v769_v12, %v534_v15 }
  0x58   : > { %v545_v18 = vmul.f32 %v771_v14, %v535_v16 }
  0x59   : > { %v546_v19 = vsub.f32 1.0, %v544_v17 }
  0x5a   : > { %v547_v20 = vsub.f32 1.0, %v545_v18 }
  0x5b   : > { %v550_v21 = vsub.f32 0.0, %v546_v19 }
  0x5c   : > { %v551_v23 = vsub.f32 0.0, %v547_v20 }
  0x5d   : > { %v552_v29 = vsel %vm548_vm10, %v550_v21, %v546_v19 }
  0x5e   : > { %v553_v30 = vsel %vm549_vm11, %v551_v23, %v547_v20  ;;  %v554_v31 = vadd.f32 1.0, %v552_v29 }
  0x5f   : > { %v555_v32 = vadd.f32 1.0, %v553_v30 }
  0x60   : > { %v556_v33 = vmul.f32 %v554_v31, %v478_v22 }
  0x61   : > { %v557_v34 = vmul.f32 %v555_v32, %v479_v24 }
  0x62   : > { %558 = vst [vmem:[%s342_s13] sm:$0xff] %v556_v33 }
  0x63   : > { %559 = vst [vmem:[%s342_s13 + $0x8] sm:$0xff] %v557_v34 }
  0x64 PF: > { %s15_s22 = sadd.s32 1, %s810_s22   ;;  %s987_s18 = smov %s802_s20 }
  0x65   : > { %p12_p10 = scmp.ge.s32.totalorder %s15_s22, 34   ;;  %s988_s19 = smov %s806_s21 }
  0x66   : > { %s989_s20 = smov %s992_s23  ;;  %s990_s21 = smov %s996_s24 }
  0x67   :  { %14 = sbr.rel (!%p12_p10) target bundleno = 3 (0x3), region = 76 }

// kernel: mlp_forward_depconv.5
= control target key start
LH: loop header
LB: loop body
LE: loop exit
PB: predicated region body
PF: predicated region fallthrough
CT: control target
= control target key end

     0   :  { %8 = vsyncpa [#allocation3], 0  ;;  %s1041_s0 = inlined_call_operand.vmem [shape: f32[512,128], index: 0, kind: input, shape index: {}]   ;;  %s1042_s1 = inlined_call_operand.vmem [shape: f32[128,32], index: 1, kind: input, shape index: {}]   ;;  %s1043_s2 = inlined_call_operand.vmem [shape: f32[1,32], index: 2, kind: input, shape index: {}]   ;;  %s1044_s3 = inlined_call_operand.hbm [shape: f32[512,32], index: 3, kind: output, shape index: {}]  }
   0x1   :  { %10 = vsyncpa [#allocation3 + $0x1], 0  ;;  %s755_s12 = smov 0   ;;  %s757_s13 = smov 0  }
   0x2   :  { %s759_s14 = smov 0   ;;  %s761_s15 = smov 0  }
   0x3   :  { %s763_s16 = smov 0   ;;  %s765_s17 = smov 0  }
   0x4 LB: > { %s531_s18 = sadd.s32 4294967295, %s731_s17   ;;  %s532_s19 = sadd.s32 4294967294, %s731_s17   ;;  %s731_s17 = sphi %s765_s17, %s16_s17   ;;  %s727_s16 = sphi %s763_s16, %s1051_s16   ;;  %s723_s15 = sphi %s761_s15, %s1050_s15   ;;  %s719_s14 = sphi %s759_s14, %s1049_s14   ;;  %s715_s13 = sphi %s757_s13, %s1048_s13   ;;  %s711_s12 = sphi %s755_s12, %s1047_s12  }
   0x5   : > { %s28_s20 = sadd.s32 1, %s727_s16  ;;  %s115_s21 = sadd.s32 1, %s719_s14 }
   0x6   : > { %p30_p0 = scmp.ge.s32.totalorder %s28_s20, 2  ;;  %p125_p1 = scmp.ne.s32.totalorder %s719_s14, %s715_s13 }
   0x7   : > { %p126_p2 = scmp.eq.s32.totalorder %s531_s18, 1  ;;  %p131_p3 = scmp.ne.s32.totalorder %s715_s13, %s711_s12 }
   0x8   : > { %s1053_s20 = smov (%p30_p0, %s28_s20), 0  ;;  %p132_p5 = scmp.eq.s32.totalorder %s532_s19, 1 }
   0x9   : > { %p795_p4 = por %p126_p2, %p125_p1  ;;  %s110_s23 = ssub.s32 %s727_s16, %s1053_s20 }
   0xa   : > { %p537_p6 = scmp.ge.s32.totalorder %s731_s17, 1  ;;  %p113_p7 = scmp.eq.s32.totalorder %s110_s23, 0 }
   0xb   : > { %p802_p8 = por %p132_p5, %p131_p3  ;;  %p172_p9 = scmp.lt.s32.totalorder %s731_s17, 3 }
   0xc   : > { %s808_s25 = scalar_select %p113_p7, %s719_s14, %s115_s21  }
   0xd   : > { %p173_p10 = pnand %p537_p6, %p172_p9 }
   0xe   : > { %s539_s23 = sshll.u32 (!%p173_p10), %s723_s15, 5  ;;  %s200_s29 = sand.u32 (!%p173_p10), 1, %s715_s13  }
   0xf   : > { %176 = sbr.rel (%p173_p10) target bundleno = 247 (0xf7), region = 32  ;;  %p204_p11 = scmp.lt.s32.totalorder (!%p173_p10), %s539_s23, 63 }
  0x10   : > { %s538_s30 = sshll.u32 (!%p173_p10), %s200_s29, 8  ;;  %s546_s7 = sshll.u32 (!%p173_p10), %s723_s15, 8 }
  0x11   : > { %s906_s6 = scalar_lea.vmem (!%p173_p10), [#allocation2], %s538_s30  ;;  %s428_s10 = scalar_lea.hbm (!%p173_p10), %s1044_s3, %s546_s7 }
  0x12   : > { %s429_s15 = sshll.u32 (!%p173_p10), %s906_s6, 4  ;;  %s431_s11 = sshll.u32 (!%p173_p10), %s428_s10, 4  ;;  %s430_s15 = int_to_ptr.vmem [resolvable:$true] %s429_s15  ;;  %s432_s11 = int_to_ptr.hbm [resolvable:$true] %s431_s11 }
  0x13   : > { %s416_s18 = scalar_lea.sflag (!%p173_p10), [#allocation3], %s200_s29  ;;  %s667_s19 = sshra.s32 (!%p173_p10), %s432_s11, 4  ;;  %s668_s19 = int_to_ptr.hbm [resolvable:$true] %s667_s19 }
  0x14   : > { %v264_v0 = vld [vmem:[%s1042_s1 + $0x78] sm:$0xff]  ;;  %v263_v1 = vld [vmem:[%s1042_s1 + $0x70] sm:$0xff]  ;;  %v262_v2 = vld [vmem:[%s1042_s1 + $0x68] sm:$0xff]  ;;  %s1055_s23 = smov (!%p204_p11, %s539_s23), 63  ;;  %vm382_vm0 = vcmask 261120   ;;  %s669_s21 = scalar_lea.hbm %s668_s19, 256 }
  0x15   : > { %548 = vmatpush.msra.mxu2 %v264_v0  ;;  %549 = vmatpush.msra.mxu3 %v264_v0  ;;  %v261_v3 = vld [vmem:[%s1042_s1 + $0x60] sm:$0xff]  ;;  %v260_v4 = vld [vmem:[%s1042_s1 + $0x58] sm:$0xff]  ;;  %v259_v5 = vld [vmem:[%s1042_s1 + $0x50] sm:$0xff]  ;;  %s540_s9 = sshll.u32 %s1055_s23, 3  ;;  %p670_p12 = scmp.ne.s32.totalorder %s668_s19, %s669_s21 }
  0x16   : > { %269 = vmatpush.msra.mxu0 %v264_v0  ;;  %547 = vmatpush.msra.mxu1 %v264_v0  ;;  %v258_v6 = vld [vmem:[%s1042_s1 + $0x48] sm:$0xff]  ;;  %v257_v7 = vld [vmem:[%s1042_s1 + $0x40] sm:$0xff]  ;;  %v256_v8 = vld [vmem:[%s1042_s1 + $0x38] sm:$0xff]  ;;  %s859_s27 = scalar_lea.vmem %s1041_s0, %s540_s9  ;;  %s673_s23 = scalar_lea.hbm %s1044_s3, 512 }
  0x17   : > { %551 = vmatpush.msra.mxu2 %v263_v1  ;;  %552 = vmatpush.msra.mxu3 %v263_v1  ;;  %v255_v9 = vld [vmem:[%s1042_s1 + $0x30] sm:$0xff]  ;;  %v254_v10 = vld [vmem:[%s1042_s1 + $0x28] sm:$0xff]  ;;  %v253_v11 = vld [vmem:[%s1042_s1 + $0x20] sm:$0xff]  ;;  %p671_p13 = pnand %p670_p12, %p795_p4  ;;  %p674_p1 = scmp.lt.s32.totalorder %s668_s19, %s1044_s3 }
  0x18   : > { %270 = vmatpush.msra.mxu0 %v263_v1  ;;  %550 = vmatpush.msra.mxu1 %v263_v1  ;;  %v252_v12 = vld [vmem:[%s1042_s1 + $0x18] sm:$0xff]  ;;  %v251_v13 = vld [vmem:[%s1042_s1 + $0x10] sm:$0xff]  ;;  %v250_v14 = vld [vmem:[%s1042_s1 + $0x8] sm:$0xff]  ;;  %p675_p2 = scmp.lt.s32.totalorder %s673_s23, %s669_s21 }
  0x19   : > { %554 = vmatpush.msra.mxu2 %v262_v2  ;;  %555 = vmatpush.msra.mxu3 %v262_v2  ;;  %v249_v15 = vld [vmem:[%s1042_s1] sm:$0xff]  ;;  %v234_v20 = vld [vmem:[%s859_s27 + $0x88] sm:$0xff]  ;;  %v235_v24 = vld [vmem:[%s859_s27 + $0x90] sm:$0xff]  ;;  %p672_p0 = pneg %p671_p13 }
  0x1a   : > { %271 = vmatpush.msra.mxu0 %v262_v2  ;;  %553 = vmatpush.msra.mxu1 %v262_v2  ;;  %v233_v16 = vld [vmem:[%s859_s27 + $0x80] sm:$0xff]  ;;  %v242_v21 = vld [vmem:[%s859_s27 + $0xc8] sm:$0xff]  ;;  %v243_v25 = vld [vmem:[%s859_s27 + $0xd0] sm:$0xff]  ;;  %p676_p3 = por %p675_p2, %p674_p1 }
  0x1b   : > { %557 = vmatpush.msra.mxu2 %v261_v3  ;;  %558 = vmatpush.msra.mxu3 %v261_v3  ;;  %v241_v17 = vld [vmem:[%s859_s27 + $0xc0] sm:$0xff]  ;;  %v218_v22 = vld [vmem:[%s859_s27 + $0x8] sm:$0xff]  ;;  %v219_v26 = vld [vmem:[%s859_s27 + $0x10] sm:$0xff] }
  0x1c   : > { %272 = vmatpush.msra.mxu0 %v261_v3  ;;  %556 = vmatpush.msra.mxu1 %v261_v3  ;;  %v217_v18 = vld [vmem:[%s859_s27] sm:$0xff]  ;;  %v226_v23 = vld [vmem:[%s859_s27 + $0x48] sm:$0xff]  ;;  %v227_v27 = vld [vmem:[%s859_s27 + $0x50] sm:$0xff]  ;;  %p677_p5 = pnand %p676_p3, %p672_p0 }
  0x1d   : > { %560 = vmatpush.msra.mxu2 %v260_v4  ;;  %561 = vmatpush.msra.mxu3 %v260_v4  ;;  %v225_v19 = vld [vmem:[%s859_s27 + $0x40] sm:$0xff]  ;;  %v236_v28 = vld [vmem:[%s859_s27 + $0x98] sm:$0xff]  ;;  %v238_v36 = vld [vmem:[%s859_s27 + $0xa8] sm:$0xff] }
  0x1e   : > { %273 = vmatpush.msra.mxu0 %v260_v4  ;;  %559 = vmatpush.msra.mxu1 %v260_v4  ;;  %v244_v29 = vld [vmem:[%s859_s27 + $0xd8] sm:$0xff]  ;;  %v237_v32 = vld [vmem:[%s859_s27 + $0xa0] sm:$0xff]  ;;  %v246_v37 = vld [vmem:[%s859_s27 + $0xe8] sm:$0xff] }
  0x1f   : > { %563 = vmatpush.msra.mxu2 %v259_v5  ;;  %564 = vmatpush.msra.mxu3 %v259_v5  ;;  %v220_v30 = vld [vmem:[%s859_s27 + $0x18] sm:$0xff]  ;;  %v245_v33 = vld [vmem:[%s859_s27 + $0xe0] sm:$0xff]  ;;  %v222_v38 = vld [vmem:[%s859_s27 + $0x28] sm:$0xff] }
  0x20   : > { %274 = vmatpush.msra.mxu0 %v259_v5  ;;  %562 = vmatpush.msra.mxu1 %v259_v5  ;;  %v228_v31 = vld [vmem:[%s859_s27 + $0x58] sm:$0xff]  ;;  %v221_v34 = vld [vmem:[%s859_s27 + $0x20] sm:$0xff]  ;;  %v230_v39 = vld [vmem:[%s859_s27 + $0x68] sm:$0xff] }
  0x21   : > { %566 = vmatpush.msra.mxu2 %v258_v6  ;;  %567 = vmatpush.msra.mxu3 %v258_v6  ;;  %v229_v35 = vld [vmem:[%s859_s27 + $0x60] sm:$0xff]  ;;  %v239_v40 = vld [vmem:[%s859_s27 + $0xb0] sm:$0xff]  ;;  %v240_v44 = vld [vmem:[%s859_s27 + $0xb8] sm:$0xff] }
  0x22   : > { %275 = vmatpush.msra.mxu0 %v258_v6  ;;  %565 = vmatpush.msra.mxu1 %v258_v6  ;;  %v247_v41 = vld [vmem:[%s859_s27 + $0xf0] sm:$0xff]  ;;  %v248_v45 = vld [vmem:[%s859_s27 + $0xf8] sm:$0xff]  ;;  %v902_v48 = vld [vmem:[%s1043_s2] ss:$0 sm:$0xff] }
  0x23   : > { %569 = vmatpush.msra.mxu2 %v257_v7  ;;  %570 = vmatpush.msra.mxu3 %v257_v7  ;;  %v223_v42 = vld [vmem:[%s859_s27 + $0x30] sm:$0xff]  ;;  %v224_v46 = vld [vmem:[%s859_s27 + $0x38] sm:$0xff] }
  0x24   : > { %276 = vmatpush.msra.mxu0 %v257_v7  ;;  %568 = vmatpush.msra.mxu1 %v257_v7  ;;  %v231_v43 = vld [vmem:[%s859_s27 + $0x70] sm:$0xff]  ;;  %v232_v47 = vld [vmem:[%s859_s27 + $0x78] sm:$0xff] }
  0x25   : > { %572 = vmatpush.msra.mxu2 %v256_v8  ;;  %573 = vmatpush.msra.mxu3 %v256_v8 }
  0x26   : > { %277 = vmatpush.msra.mxu0 %v256_v8  ;;  %571 = vmatpush.msra.mxu1 %v256_v8 }
  0x27   : > { %575 = vmatpush.msra.mxu2 %v255_v9  ;;  %576 = vmatpush.msra.mxu3 %v255_v9 }
  0x28   : > { %278 = vmatpush.msra.mxu0 %v255_v9  ;;  %574 = vmatpush.msra.mxu1 %v255_v9 }
  0x29   : > { %578 = vmatpush.msra.mxu2 %v254_v10  ;;  %579 = vmatpush.msra.mxu3 %v254_v10 }
  0x2a   : > { %279 = vmatpush.msra.mxu0 %v254_v10  ;;  %577 = vmatpush.msra.mxu1 %v254_v10 }
  0x2b   : > { %581 = vmatpush.msra.mxu2 %v253_v11  ;;  %582 = vmatpush.msra.mxu3 %v253_v11 }
  0x2c   : > { %280 = vmatpush.msra.mxu0 %v253_v11  ;;  %580 = vmatpush.msra.mxu1 %v253_v11 }
  0x2d   : > { %584 = vmatpush.msra.mxu2 %v252_v12  ;;  %585 = vmatpush.msra.mxu3 %v252_v12 }
  0x2e   : > { %281 = vmatpush.msra.mxu0 %v252_v12  ;;  %583 = vmatpush.msra.mxu1 %v252_v12 }
  0x2f   : > { %587 = vmatpush.msra.mxu2 %v251_v13  ;;  %588 = vmatpush.msra.mxu3 %v251_v13 }
  0x30   : > { %282 = vmatpush.msra.mxu0 %v251_v13  ;;  %586 = vmatpush.msra.mxu1 %v251_v13 }
  0x31   : > { %590 = vmatpush.msra.mxu2 %v250_v14  ;;  %591 = vmatpush.msra.mxu3 %v250_v14 }
  0x32   : > { %283 = vmatpush.msra.mxu0 %v250_v14  ;;  %589 = vmatpush.msra.mxu1 %v250_v14 }
  0x33   : > { %593 = vmatpush.msra.mxu2 %v249_v15  ;;  %594 = vmatpush.msra.mxu3 %v249_v15 }
  0x34   : > { %333 = vmatmul.f32.vlgmr.msra.gmra.mxu2 %v233_v16  ;;  %357 = vmatmul.f32.vlgmr.msra.gmra.mxu3 %v241_v17 }
  0x35   : > { %284 = vmatpush.msra.mxu0 %v249_v15  ;;  %592 = vmatpush.msra.mxu1 %v249_v15 }
  0x36   : > { %285 = vmatmul.f32.vlgmr.msra.gmra.mxu0 %v217_v18  ;;  %309 = vmatmul.f32.vlgmr.msra.gmra.mxu1 %v225_v19 }
  0x3c   : > { %336 = vmatmul.f32.gmra.mxu2 %v234_v20  ;;  %360 = vmatmul.f32.gmra.mxu3 %v242_v21 }
  0x3e   : > { %288 = vmatmul.f32.gmra.mxu0 %v218_v22  ;;  %312 = vmatmul.f32.gmra.mxu1 %v226_v23 }
  0x44   : > { %339 = vmatmul.f32.gmra.mxu2 %v235_v24  ;;  %363 = vmatmul.f32.gmra.mxu3 %v243_v25 }
  0x46   : > { %291 = vmatmul.f32.gmra.mxu0 %v219_v26  ;;  %315 = vmatmul.f32.gmra.mxu1 %v227_v27 }
  0x4c   : > { %342 = vmatmul.f32.gmra.mxu2 %v236_v28  ;;  %366 = vmatmul.f32.gmra.mxu3 %v244_v29 }
  0x4e   : > { %294 = vmatmul.f32.gmra.mxu0 %v220_v30  ;;  %318 = vmatmul.f32.gmra.mxu1 %v228_v31 }
  0x54   : > { %345 = vmatmul.f32.gmra.mxu2 %v237_v32  ;;  %369 = vmatmul.f32.gmra.mxu3 %v245_v33 }
  0x56   : > { %297 = vmatmul.f32.gmra.mxu0 %v221_v34  ;;  %321 = vmatmul.f32.gmra.mxu1 %v229_v35 }
  0x5c   : > { %348 = vmatmul.f32.gmra.mxu2 %v238_v36  ;;  %372 = vmatmul.f32.gmra.mxu3 %v246_v37 }
  0x5e   : > { %300 = vmatmul.f32.gmra.mxu0 %v222_v38  ;;  %324 = vmatmul.f32.gmra.mxu1 %v230_v39 }
  0x64   : > { %351 = vmatmul.f32.gmra.mxu2 %v239_v40  ;;  %375 = vmatmul.f32.gmra.mxu3 %v247_v41 }
  0x66   : > { %303 = vmatmul.f32.gmra.mxu0 %v223_v42  ;;  %327 = vmatmul.f32.gmra.mxu1 %v231_v43 }
  0x6c   : > { %354 = vmatmul.f32.gmra.mxu2 %v240_v44  ;;  %378 = vmatmul.f32.gmra.mxu3 %v248_v45 }
  0x6e   : > { %306 = vmatmul.f32.gmra.mxu0 %v224_v46  ;;  %330 = vmatmul.f32.gmra.mxu1 %v232_v47 }
  0xb3   : > { %v286_v49 = vpop.f32.mrf.mxu0  ;;  %v310_v50 = vpop.f32.mrf.mxu1 }
  0xb4   : > { %v287_v51 = vadd.f32 %v902_v48, %v286_v49  ;;  %v311_v52 = vadd.f32 %v902_v48, %v310_v50 }
  0xb6   : > { %383 = vst.msk [vmem:[%s906_s6] sm:$0xff] %vm382_vm0, %v287_v51 }
  0xb7   : > { %391 = vst.msk [vmem:[%s906_s6 + $0x40] sm:$0xff] %vm382_vm0, %v311_v52  ;;  %v334_v53 = vpop.f32.mrf.mxu2  ;;  %v358_v54 = vpop.f32.mrf.mxu3 }
  0xb8   : > { %v335_v55 = vadd.f32 %v902_v48, %v334_v53  ;;  %v359_v56 = vadd.f32 %v902_v48, %v358_v54 }
  0xba   : > { %399 = vst.msk [vmem:[%s906_s6 + $0x80] sm:$0xff] %vm382_vm0, %v335_v55 }
  0xbb   : > { %407 = vst.msk [vmem:[%s906_s6 + $0xc0] sm:$0xff] %vm382_vm0, %v359_v56  ;;  %v289_v57 = vpop.f32.mrf.mxu0  ;;  %v313_v58 = vpop.f32.mrf.mxu1 }
  0xbc   : > { %v290_v59 = vadd.f32 %v902_v48, %v289_v57  ;;  %v314_v60 = vadd.f32 %v902_v48, %v313_v58 }
  0xbe   : > { %384 = vst.msk [vmem:[%s906_s6 + $0x8] sm:$0xff] %vm382_vm0, %v290_v59 }
  0xbf   : > { %392 = vst.msk [vmem:[%s906_s6 + $0x48] sm:$0xff] %vm382_vm0, %v314_v60  ;;  %v337_v61 = vpop.f32.mrf.mxu2  ;;  %v361_v62 = vpop.f32.mrf.mxu3 }
  0xc0   : > { %v338_v63 = vadd.f32 %v902_v48, %v337_v61  ;;  %v362_v0 = vadd.f32 %v902_v48, %v361_v62 }
  0xc2   : > { %400 = vst.msk [vmem:[%s906_s6 + $0x88] sm:$0xff] %vm382_vm0, %v338_v63 }
  0xc3   : > { %408 = vst.msk [vmem:[%s906_s6 + $0xc8] sm:$0xff] %vm382_vm0, %v362_v0  ;;  %v292_v1 = vpop.f32.mrf.mxu0  ;;  %v316_v2 = vpop.f32.mrf.mxu1 }
  0xc4   : > { %v293_v3 = vadd.f32 %v902_v48, %v292_v1  ;;  %v317_v4 = vadd.f32 %v902_v48, %v316_v2 }
  0xc6   : > { %385 = vst.msk [vmem:[%s906_s6 + $0x10] sm:$0xff] %vm382_vm0, %v293_v3 }
  0xc7   : > { %393 = vst.msk [vmem:[%s906_s6 + $0x50] sm:$0xff] %vm382_vm0, %v317_v4  ;;  %v340_v5 = vpop.f32.mrf.mxu2  ;;  %v364_v6 = vpop.f32.mrf.mxu3 }
  0xc8   : > { %v341_v7 = vadd.f32 %v902_v48, %v340_v5  ;;  %v365_v8 = vadd.f32 %v902_v48, %v364_v6 }
  0xca   : > { %401 = vst.msk [vmem:[%s906_s6 + $0x90] sm:$0xff] %vm382_vm0, %v341_v7 }
  0xcb   : > { %409 = vst.msk [vmem:[%s906_s6 + $0xd0] sm:$0xff] %vm382_vm0, %v365_v8  ;;  %v295_v9 = vpop.f32.mrf.mxu0  ;;  %v319_v10 = vpop.f32.mrf.mxu1 }
  0xcc   : > { %v296_v11 = vadd.f32 %v902_v48, %v295_v9  ;;  %v320_v12 = vadd.f32 %v902_v48, %v319_v10 }
  0xce   : > { %386 = vst.msk [vmem:[%s906_s6 + $0x18] sm:$0xff] %vm382_vm0, %v296_v11 }
  0xcf   : > { %394 = vst.msk [vmem:[%s906_s6 + $0x58] sm:$0xff] %vm382_vm0, %v320_v12  ;;  %v343_v13 = vpop.f32.mrf.mxu2  ;;  %v367_v14 = vpop.f32.mrf.mxu3 }
  0xd0   : > { %v344_v15 = vadd.f32 %v902_v48, %v343_v13  ;;  %v368_v16 = vadd.f32 %v902_v48, %v367_v14 }
  0xd2   : > { %402 = vst.msk [vmem:[%s906_s6 + $0x98] sm:$0xff] %vm382_vm0, %v344_v15 }
  0xd3   : > { %410 = vst.msk [vmem:[%s906_s6 + $0xd8] sm:$0xff] %vm382_vm0, %v368_v16  ;;  %v298_v17 = vpop.f32.mrf.mxu0  ;;  %v322_v18 = vpop.f32.mrf.mxu1 }
  0xd4   : > { %v299_v19 = vadd.f32 %v902_v48, %v298_v17  ;;  %v323_v20 = vadd.f32 %v902_v48, %v322_v18 }
  0xd6   : > { %387 = vst.msk [vmem:[%s906_s6 + $0x20] sm:$0xff] %vm382_vm0, %v299_v19 }
  0xd7   : > { %395 = vst.msk [vmem:[%s906_s6 + $0x60] sm:$0xff] %vm382_vm0, %v323_v20  ;;  %v346_v21 = vpop.f32.mrf.mxu2  ;;  %v370_v22 = vpop.f32.mrf.mxu3 }
  0xd8   : > { %v347_v23 = vadd.f32 %v902_v48, %v346_v21  ;;  %v371_v24 = vadd.f32 %v902_v48, %v370_v22 }
  0xda   : > { %403 = vst.msk [vmem:[%s906_s6 + $0xa0] sm:$0xff] %vm382_vm0, %v347_v23 }
  0xdb   : > { %411 = vst.msk [vmem:[%s906_s6 + $0xe0] sm:$0xff] %vm382_vm0, %v371_v24  ;;  %v301_v25 = vpop.f32.mrf.mxu0  ;;  %v325_v26 = vpop.f32.mrf.mxu1 }
  0xdc   : > { %v302_v27 = vadd.f32 %v902_v48, %v301_v25  ;;  %v326_v28 = vadd.f32 %v902_v48, %v325_v26 }
  0xde   : > { %388 = vst.msk [vmem:[%s906_s6 + $0x28] sm:$0xff] %vm382_vm0, %v302_v27 }
  0xdf   : > { %396 = vst.msk [vmem:[%s906_s6 + $0x68] sm:$0xff] %vm382_vm0, %v326_v28  ;;  %v349_v29 = vpop.f32.mrf.mxu2  ;;  %v373_v30 = vpop.f32.mrf.mxu3 }
  0xe0   : > { %v350_v31 = vadd.f32 %v902_v48, %v349_v29  ;;  %v374_v32 = vadd.f32 %v902_v48, %v373_v30 }
  0xe2   : > { %404 = vst.msk [vmem:[%s906_s6 + $0xa8] sm:$0xff] %vm382_vm0, %v350_v31 }
  0xe3   : > { %412 = vst.msk [vmem:[%s906_s6 + $0xe8] sm:$0xff] %vm382_vm0, %v374_v32  ;;  %v304_v33 = vpop.f32.mrf.mxu0  ;;  %v328_v34 = vpop.f32.mrf.mxu1 }
  0xe4   : > { %v305_v35 = vadd.f32 %v902_v48, %v304_v33  ;;  %v329_v36 = vadd.f32 %v902_v48, %v328_v34 }
  0xe6   : > { %389 = vst.msk [vmem:[%s906_s6 + $0x30] sm:$0xff] %vm382_vm0, %v305_v35 }
  0xe7   : > { %397 = vst.msk [vmem:[%s906_s6 + $0x70] sm:$0xff] %vm382_vm0, %v329_v36  ;;  %v352_v37 = vpop.f32.mrf.mxu2  ;;  %v376_v38 = vpop.f32.mrf.mxu3 }
  0xe8   : > { %v353_v39 = vadd.f32 %v902_v48, %v352_v37  ;;  %v377_v40 = vadd.f32 %v902_v48, %v376_v38 }
  0xea   : > { %405 = vst.msk [vmem:[%s906_s6 + $0xb0] sm:$0xff] %vm382_vm0, %v353_v39 }
  0xeb   : > { %413 = vst.msk [vmem:[%s906_s6 + $0xf0] sm:$0xff] %vm382_vm0, %v377_v40  ;;  %v307_v41 = vpop.f32.mrf.mxu0  ;;  %v331_v42 = vpop.f32.mrf.mxu1 }
  0xec   : > { %v308_v43 = vadd.f32 %v902_v48, %v307_v41  ;;  %v332_v44 = vadd.f32 %v902_v48, %v331_v42 }
  0xee   : > { %390 = vst.msk [vmem:[%s906_s6 + $0x38] sm:$0xff] %vm382_vm0, %v308_v43 }
  0xef   : > { %398 = vst.msk [vmem:[%s906_s6 + $0x78] sm:$0xff] %vm382_vm0, %v332_v44  ;;  %v355_v45 = vpop.f32.mrf.mxu2  ;;  %v379_v46 = vpop.f32.mrf.mxu3 }
  0xf0   : > { %v356_v47 = vadd.f32 %v902_v48, %v355_v45  ;;  %v380_v49 = vadd.f32 %v902_v48, %v379_v46 }
  0xf2   : > { %406 = vst.msk [vmem:[%s906_s6 + $0xb8] sm:$0xff] %vm382_vm0, %v356_v47 }
  0xf3   : > { %414 = vst.msk [vmem:[%s906_s6 + $0xf8] sm:$0xff] %vm382_vm0, %v380_v49 }
  0xf4   : > { %680 = shalt.err (!%p677_p5)
}
  0xf5   : > { %s733_s29 = smov 128   ;;  %s734_s4 = smov 8  }
  0xf6   : > { %595 = dma.vmem_to_hbm [thread:$0]  (%p795_p4), %s430_s15, 4096, %s432_s11, %s416_s18, %s733_s29, %s733_s29, %s734_s4  }
  0xf7 PF: > { %p601_p6 = scmp.ge.s32.totalorder %s731_s17, 2  ;;  %s446_s5 = sand.u32 1, %s711_s12  }
  0xf8   : > { %s447_s6 = scalar_lea.sflag [#allocation3], %s446_s5 }
  0xf9   : > { %p598_p7 = pnand %p601_p6, %p802_p8 }
  0xfb   : > { %p599_p9 = pneg %p598_p7 }
  0xfd   : > { %706 = dma.done.wait (%p599_p9), %s447_s6, 4096  }
  0xfe   : > { %708 = vsyncadd (%p599_p9), %s447_s6, 4294963200  ;;  %s16_s17 = sadd.s32 1, %s731_s17   ;;  %s1047_s12 = smov %s715_s13 }
  0xff   : > { %p13_p10 = scmp.ge.s32.totalorder %s16_s17, 4   ;;  %s1048_s13 = smov %s719_s14 }
 0x100   : > { %s1049_s14 = smov %s808_s25  ;;  %s1050_s15 = smov %s727_s16 }
 0x101   : > { %s1051_s16 = smov %s1053_s20  ;;  %15 = sbr.rel (!%p13_p10) target bundleno = 4 (0x4), region = 73 }
 0x106   :  { %453 = vsyncpa [#allocation3], 1 }
 0x107   :  { %455 = vsyncpa [#allocation3 + $0x1], 1 }

</bundles_post_ra>
